<compile_context>
chip_gen: v7x
topology: tpu7x:2x2x1
jax: 0.10.0
libtpu: 0.0.40
codegen_flags: <defaults>
</compile_context>

<pallas_src>
from functools import partial

import jax
import jax.numpy as jnp
from jax.experimental import pallas as pl
from jax.experimental.pallas import tpu as pltpu


# ----------------------------- in-kernel helpers -----------------------------

def _layer_norm(x, gamma, eps=1e-5):
    # F.layer_norm over the last dim with beta == 0 (registered zero buffer).
    mu = jnp.mean(x, axis=-1, keepdims=True)
    xc = x - mu
    var = jnp.mean(xc * xc, axis=-1, keepdims=True)
    return xc * jax.lax.rsqrt(var + eps) * gamma


# ----------------------------- fused LinearAttention kernel ------------------

def _linear_attention_kernel(x_ref, sc_ref, sh_ref, gx_ref, gq_ref, gk_ref,
                             wqkv_ref, wo_ref, mask_ref, go_ref, o_ref,
                             *, heads, dim_head, use_norm, use_qk_norm):
    hidden = heads * dim_head

    # ---- pre-norm + (hoisted) time conditioning: x * (scale+1) + shift -----
    x = x_ref[0].astype(jnp.float32)                        # (n, d)
    xn = _layer_norm(x, gx_ref[...]) if use_norm else x
    xm = (xn * sc_ref[0] + sh_ref[0]).astype(jnp.bfloat16)  # scale has +1 folded in

    # ---- fused lane-dense QKV projection: (n,d) @ (d, 3*hidden) -------------
    qkv = jnp.dot(xm, wqkv_ref[...], preferred_element_type=jnp.float32)
    q = qkv[:, :hidden]                                      # (n, hidden) f32
    k = qkv[:, hidden:2 * hidden]
    v = qkv[:, 2 * hidden:]

    # block-diagonal (hidden, hidden) ones matrix: one MXU matmul implements a
    # per-head segmented sum broadcast back over each head's lanes.
    mask_bf = mask_ref[...]                                  # bf16 0/1

    if use_qk_norm:
        # MultiHeadedRMSNorm: F.normalize(x, dim=-1) * sqrt(dim_head) * gamma
        scale_rms = dim_head ** 0.5
        ssq = jnp.dot((q * q).astype(jnp.bfloat16), mask_bf,
                      preferred_element_type=jnp.float32)
        q = q * jax.lax.rsqrt(jnp.maximum(ssq, 1e-24)) * scale_rms * gq_ref[...]
        ssk = jnp.dot((k * k).astype(jnp.bfloat16), mask_bf,
                      preferred_element_type=jnp.float32)
        k = k * jax.lax.rsqrt(jnp.maximum(ssk, 1e-24)) * scale_rms * gk_ref[...]

    # ---- q: per-head softmax over features ----------------------------------
    # Row-wide max over all 128 lanes is a valid stabilizer for every head's
    # softmax (softmax is shift-invariant), and keeps the reduce lane-dense.
    mq = jnp.max(q, axis=-1, keepdims=True)                  # (n, 1)
    eq = jnp.exp(q - mq)                                     # (n, hidden)
    denq = jnp.dot(eq.astype(jnp.bfloat16), mask_bf,         # per-head sums
                   preferred_element_type=jnp.float32)
    q = eq * pl.reciprocal(denq, approx=True) * (dim_head ** -0.5)

    # ---- k: softmax over the sequence (per column) — already lane-dense -----
    mk = jnp.max(k, axis=0, keepdims=True)                   # (1, hidden)
    ek = jnp.exp(k - mk)
    denk = jnp.sum(ek, axis=0, keepdims=True)
    k = ek * pl.reciprocal(denk, approx=True)

    # ---- dense context + block-diagonal mask ---------------------------------
    # ctx_dense[r, c] = sum_n k[n, r] * v[n, c]; zero cross-head blocks so that
    # out = q @ ctx_bd reproduces the per-head einsums exactly.
    ctx = jnp.einsum('nd,ne->de', k.astype(jnp.bfloat16), v.astype(jnp.bfloat16),
                     preferred_element_type=jnp.float32)     # (hidden, hidden)
    ctx = ctx * mask_bf.astype(jnp.float32)

    out = jnp.dot(q.astype(jnp.bfloat16), ctx.astype(jnp.bfloat16),
                  preferred_element_type=jnp.float32)        # (n, hidden)

    # ---- to_out: single full-lane contraction over (h, e) = hidden ----------
    y = jnp.dot(out.astype(jnp.bfloat16), wo_ref[...],
                preferred_element_type=jnp.float32)          # (n, d)

    o_ref[0] = _layer_norm(y, go_ref[...]).astype(o_ref.dtype)


def linear_attention(x, time, p, *, heads, dim_head,
                     use_norm=True, use_qk_norm=False):
    """Forward pass of the PyTorch LinearAttention module (no residual)."""
    B, n, d = x.shape
    hidden = heads * dim_head

    # --- hoisted time conditioning (tiny (B,T)x(T,2d) matmul, plain XLA) -----
    # '+1' is folded into the scale here (micro-opt from the review).
    if time is not None and "wt" in p:
        tcond = jnp.dot(jax.nn.silu(time), p["wt"]) + p["bt"]        # (B, 2d)
        scale_p1 = (tcond[:, None, :d] + 1.0).astype(jnp.float32)    # (B, 1, d)
        shift_t = tcond[:, None, d:].astype(jnp.float32)             # (B, 1, d)
    else:
        scale_p1 = jnp.ones((B, 1, d), jnp.float32)
        shift_t = jnp.zeros((B, 1, d), jnp.float32)

    # --- bf16 weights, kept fused (no per-head split) -------------------------
    wqkv = p["wqkv"].astype(jnp.bfloat16)                    # (d, 3*hidden)
    wo = p["wo"].astype(jnp.bfloat16)                        # (hidden, d)

    gx = p["gamma"].astype(jnp.float32)                      # (1, d)
    go = p["gamma_out"].astype(jnp.float32)                  # (1, d)
    gq = p.get("gamma_q", jnp.ones((heads, 1, dim_head), jnp.float32))
    gk = p.get("gamma_k", jnp.ones((heads, 1, dim_head), jnp.float32))
    gq_dense = gq.reshape(1, hidden).astype(jnp.float32)     # lane-dense gammas
    gk_dense = gk.reshape(1, hidden).astype(jnp.float32)

    # block-diagonal ones matrix (heads blocks of dim_head x dim_head)
    head_id = jnp.arange(hidden) // dim_head
    blk_mask = (head_id[:, None] == head_id[None, :]).astype(jnp.bfloat16)

    kern = partial(_linear_attention_kernel, heads=heads, dim_head=dim_head,
                   use_norm=use_norm, use_qk_norm=use_qk_norm)

    # Advisory cost estimate so XLA schedules the surrounding ops sensibly.
    flops = (2 * B * n * d * 3 * hidden            # qkv projection
             + 3 * 2 * B * n * hidden * hidden     # seg-sum + ctx + out matmuls
             + 2 * B * n * hidden * d)             # to_out
    cost = pl.CostEstimate(
        flops=int(flops),
        transcendentals=int(2 * B * n * hidden),
        bytes_accessed=int(4 * B * n * d * 2
                           + 2 * (d * 3 * hidden + hidden * d + hidden * hidden)))

    # NOTE(v7x): at production n, the f32 (n, hidden) q/k/v/out intermediates
    # grow linearly in n; tile over n (two-pass k-softmax) or raise
    # vmem_limit_bytes before reusing this kernel at n >> 1K on 64 MiB VMEM.
    return pl.pallas_call(
        kern,
        out_shape=jax.ShapeDtypeStruct((B, n, d), x.dtype),
        grid=(B,),
        in_specs=[
            pl.BlockSpec((1, n, d), lambda b: (b, 0, 0)),            # x
            pl.BlockSpec((1, 1, d), lambda b: (b, 0, 0)),            # scale (+1)
            pl.BlockSpec((1, 1, d), lambda b: (b, 0, 0)),            # shift
            pl.BlockSpec((1, d), lambda b: (0, 0)),                  # gamma (pre-LN)
            pl.BlockSpec((1, hidden), lambda b: (0, 0)),             # gamma_q (dense)
            pl.BlockSpec((1, hidden), lambda b: (0, 0)),             # gamma_k (dense)
            pl.BlockSpec((d, 3 * hidden), lambda b: (0, 0)),         # wqkv (fused)
            pl.BlockSpec((hidden, d), lambda b: (0, 0)),             # wo
            pl.BlockSpec((hidden, hidden), lambda b: (0, 0)),        # block-diag mask
            pl.BlockSpec((1, d), lambda b: (0, 0)),                  # gamma (to_out LN)
        ],
        out_specs=pl.BlockSpec((1, n, d), lambda b: (b, 0, 0)),
        compiler_params=pltpu.CompilerParams(
            dimension_semantics=("parallel",)),      # both v7x TCs at B >= 2
        cost_estimate=cost,
    )(x, scale_p1, shift_t, gx, gq_dense, gk_dense, wqkv, wo, blk_mask, go)


# ----------------------------- pure-JAX reference (f32) ----------------------

def linear_attention_ref(x, time, p, *, heads, dim_head,
                         use_norm=True, use_qk_norm=False):
    B, n, d = x.shape
    hidden = heads * dim_head

    def ln(v, g):
        mu = v.mean(-1, keepdims=True)
        var = ((v - mu) ** 2).mean(-1, keepdims=True)
        return (v - mu) * jax.lax.rsqrt(var + 1e-5) * g

    xn = ln(x, p["gamma"]) if use_norm else x
    if time is not None and "wt" in p:
        tc = jax.nn.silu(time) @ p["wt"] + p["bt"]
        xn = xn * (tc[:, None, :d] + 1.0) + tc[:, None, d:]
    qkv = xn @ p["wqkv"]
    q, k, v = jnp.split(qkv, 3, axis=-1)

    def split_heads(a):
        return a.reshape(B, n, heads, dim_head).transpose(0, 2, 1, 3)

    q, k, v = map(split_heads, (q, k, v))
    if use_qk_norm:
        def mh(a, g):
            nrm = jnp.maximum(jnp.linalg.norm(a, axis=-1, keepdims=True), 1e-12)
            return a / nrm * (dim_head ** 0.5) * g
        q = mh(q, p["gamma_q"])
        k = mh(k, p["gamma_k"])
    q = jax.nn.softmax(q, axis=-1) * (dim_head ** -0.5)
    k = jax.nn.softmax(k, axis=-2)
    ctx = jnp.einsum('bhnd,bhne->bhde', k, v)
    out = jnp.einsum('bhde,bhnd->bhne', ctx, q)
    out = out.transpose(0, 2, 1, 3).reshape(B, n, hidden)
    y = out @ p["wo"]
    return ln(y, p["gamma_out"])


# ----------------------------- parameter init (deterministic) ----------------

def _normal(key, shape, scale=0.05):
    return scale * jax.random.normal(key, shape, jnp.float32)


def init_linear_attention_params(key, dim, heads, dim_head,
                                 time_cond_dim=None, qk_norm=False):
    hidden = heads * dim_head
    k = jax.random.split(key, 4)
    p = dict(
        gamma=jnp.ones((1, dim), jnp.float32),          # LayerNorm (norm=True)
        wqkv=_normal(k[0], (dim, 3 * hidden)),          # to_qkv (no bias)
        wo=_normal(k[1], (hidden, dim)),                # to_out Linear (no bias)
        gamma_out=jnp.ones((1, dim), jnp.float32),      # to_out LayerNorm
    )
    if time_cond_dim is not None:
        # NOTE: the PyTorch module zero-inits this Linear (making the time path
        # a no-op at init); small random values are used here so the path is
        # actually exercised.
        p["wt"] = _normal(k[2], (time_cond_dim, 2 * dim))
        p["bt"] = _normal(k[3], (1, 2 * dim))
    if qk_norm:
        p["gamma_q"] = jnp.ones((heads, 1, dim_head), jnp.float32)
        p["gamma_k"] = jnp.ones((heads, 1, dim_head), jnp.float32)
    return p


# ----------------------------- main -------------------------------------------

if __name__ == "__main__":
    B = 2            # >= 2 keeps both v7x TensorCores busy via the parallel grid
    dim = 128        # lane-dense feature dim (= heads * dim_head)
    heads = 4        # module defaults
    dim_head = 32
    n = 128          # sequence length
    tdim = 64        # time_cond_dim

    key = jax.random.PRNGKey(0)
    kx, kt, kp = jax.random.split(key, 3)
    x = jax.random.normal(kx, (B, n, dim), jnp.float32)
    t = jax.random.normal(kt, (B, tdim), jnp.float32)
    params = init_linear_attention_params(kp, dim, heads, dim_head,
                                          time_cond_dim=tdim, qk_norm=False)

    fwd = jax.jit(partial(linear_attention, heads=heads, dim_head=dim_head,
                          use_norm=True, use_qk_norm=False))
    out = fwd(x, t, params)
    jax.block_until_ready(out)

    assert out.shape == (B, n, dim)
    assert bool(jnp.all(jnp.isfinite(out)))

    # Loose-tolerance check against the f32 reference (kernel uses bf16 MXU
    # operands, bf16 segmented-sum matmuls and EUP approx reciprocal, so ~1e-2
    # relative differences are expected).
    ref = linear_attention_ref(x, t, params, heads=heads, dim_head=dim_head,
                               use_norm=True, use_qk_norm=False)
    max_diff = float(jnp.max(jnp.abs(out - ref)))
    assert max_diff < 0.3, f"max abs diff vs f32 reference too large: {max_diff}"

    print("KERNEL_OK")
</pallas_src>

<mosaic_0001>
module attributes {stable_mosaic.version = 11 : i64} {
  func.func @_linear_attention_kernel(%arg0: i32, %arg1: memref<1x128x128xf32, #tpu.memory_space<vmem>>, %arg2: memref<1x1x128xf32, #tpu.memory_space<vmem>>, %arg3: memref<1x1x128xf32, #tpu.memory_space<vmem>>, %arg4: memref<1x128xf32, #tpu.memory_space<vmem>>, %arg5: memref<1x128xf32, #tpu.memory_space<vmem>>, %arg6: memref<1x128xf32, #tpu.memory_space<vmem>>, %arg7: memref<128x384xbf16, #tpu.memory_space<vmem>>, %arg8: memref<128x128xbf16, #tpu.memory_space<vmem>>, %arg9: memref<128x128xbf16, #tpu.memory_space<vmem>>, %arg10: memref<1x128xf32, #tpu.memory_space<vmem>>, %arg11: memref<1x128x128xf32, #tpu.memory_space<vmem>>) attributes {dimension_semantics = [#tpu.dimension_semantics<parallel>], iteration_bounds = array<i64: 2>, scalar_prefetch = 0 : i64, scratch_operands = 0 : i64, tpu.core_type = #tpu.core_type<tc>, window_params = [{transform_indices = @transform_0, window_bounds = array<i64: 1, 128, 128>}, {transform_indices = @transform_1, window_bounds = array<i64: 1, 1, 128>}, {transform_indices = @transform_2, window_bounds = array<i64: 1, 1, 128>}, {pipeline_mode = #tpu.pipeline_mode<synchronous>, transform_indices = @transform_3, window_bounds = array<i64: 1, 128>}, {pipeline_mode = #tpu.pipeline_mode<synchronous>, transform_indices = @transform_4, window_bounds = array<i64: 1, 128>}, {pipeline_mode = #tpu.pipeline_mode<synchronous>, transform_indices = @transform_5, window_bounds = array<i64: 1, 128>}, {pipeline_mode = #tpu.pipeline_mode<synchronous>, transform_indices = @transform_6, window_bounds = array<i64: 128, 384>}, {pipeline_mode = #tpu.pipeline_mode<synchronous>, transform_indices = @transform_7, window_bounds = array<i64: 128, 128>}, {pipeline_mode = #tpu.pipeline_mode<synchronous>, transform_indices = @transform_8, window_bounds = array<i64: 128, 128>}, {pipeline_mode = #tpu.pipeline_mode<synchronous>, transform_indices = @transform_9, window_bounds = array<i64: 1, 128>}, {transform_indices = @transform_10, window_bounds = array<i64: 1, 128, 128>}]} {
    %c0 = arith.constant 0 : index
    %c0_0 = arith.constant 0 : index
    %c0_1 = arith.constant 0 : index
    %0 = vector.load %arg1[%c0, %c0_0, %c0_1] : memref<1x128x128xf32, #tpu.memory_space<vmem>>, vector<1x128x128xf32>
    %1 = vector.shape_cast %0 : vector<1x128x128xf32> to vector<128x128xf32>
    %c0_2 = arith.constant 0 : index
    %c0_3 = arith.constant 0 : index
    %2 = vector.load %arg4[%c0_2, %c0_3] : memref<1x128xf32, #tpu.memory_space<vmem>>, vector<1x128xf32>
    %cst = arith.constant dense<0.000000e+00> : vector<128xf32>
    %3 = vector.multi_reduction <add>, %1, %cst [1] : vector<128x128xf32> to vector<128xf32>
    %4 = vector.shape_cast %3 : vector<128xf32> to vector<128x1xf32>
    %cst_4 = arith.constant 1.280000e+02 : f32
    %5 = vector.broadcast %cst_4 : f32 to vector<128x1xf32>
    %6 = arith.divf %4, %5 : vector<128x1xf32>
    %7 = vector.broadcast %6 : vector<128x1xf32> to vector<128x128xf32>
    %8 = arith.subf %1, %7 : vector<128x128xf32>
    %9 = arith.mulf %8, %8 : vector<128x128xf32>
    %cst_5 = arith.constant dense<0.000000e+00> : vector<128xf32>
    %10 = vector.multi_reduction <add>, %9, %cst_5 [1] : vector<128x128xf32> to vector<128xf32>
    %11 = vector.shape_cast %10 : vector<128xf32> to vector<128x1xf32>
    %cst_6 = arith.constant 1.280000e+02 : f32
    %12 = vector.broadcast %cst_6 : f32 to vector<128x1xf32>
    %13 = arith.divf %11, %12 : vector<128x1xf32>
    %cst_7 = arith.constant 9.99999974E-6 : f32
    %14 = vector.broadcast %cst_7 : f32 to vector<128x1xf32>
    %15 = arith.addf %13, %14 : vector<128x1xf32>
    %16 = math.rsqrt %15 : vector<128x1xf32>
    %17 = vector.broadcast %16 : vector<128x1xf32> to vector<128x128xf32>
    %18 = arith.mulf %8, %17 : vector<128x128xf32>
    %19 = vector.broadcast %2 : vector<1x128xf32> to vector<128x128xf32>
    %20 = arith.mulf %18, %19 : vector<128x128xf32>
    %c0_8 = arith.constant 0 : index
    %c0_9 = arith.constant 0 : index
    %c0_10 = arith.constant 0 : index
    %21 = vector.load %arg2[%c0_8, %c0_9, %c0_10] : memref<1x1x128xf32, #tpu.memory_space<vmem>>, vector<1x1x128xf32>
    %22 = vector.shape_cast %21 : vector<1x1x128xf32> to vector<1x128xf32>
    %23 = vector.broadcast %22 : vector<1x128xf32> to vector<128x128xf32>
    %24 = arith.mulf %20, %23 : vector<128x128xf32>
    %c0_11 = arith.constant 0 : index
    %c0_12 = arith.constant 0 : index
    %c0_13 = arith.constant 0 : index
    %25 = vector.load %arg3[%c0_11, %c0_12, %c0_13] : memref<1x1x128xf32, #tpu.memory_space<vmem>>, vector<1x1x128xf32>
    %26 = vector.shape_cast %25 : vector<1x1x128xf32> to vector<1x128xf32>
    %27 = vector.broadcast %26 : vector<1x128xf32> to vector<128x128xf32>
    %28 = arith.addf %24, %27 : vector<128x128xf32>
    %29 = arith.truncf %28 : vector<128x128xf32> to vector<128x128xbf16>
    %c0_14 = arith.constant 0 : index
    %c0_15 = arith.constant 0 : index
    %30 = vector.load %arg7[%c0_14, %c0_15] : memref<128x384xbf16, #tpu.memory_space<vmem>>, vector<128x384xbf16>
    %cst_16 = arith.constant dense<0.000000e+00> : vector<128x384xf32>
    %31 = tpu.matmul %29, %30, %cst_16 {dimension_numbers = #tpu.dot_dimension_numbers<[1], [0], [0], [1], [0, 0, 1, 1], [], []>} : vector<128x128xbf16>, vector<128x384xbf16>, vector<128x384xf32> -> vector<128x384xf32>
    %32 = vector.extract_strided_slice %31 {offsets = [0, 0], sizes = [128, 128], strides = [1, 1]} : vector<128x384xf32> to vector<128x128xf32>
    %33 = vector.extract_strided_slice %31 {offsets = [0, 128], sizes = [128, 128], strides = [1, 1]} : vector<128x384xf32> to vector<128x128xf32>
    %34 = vector.extract_strided_slice %31 {offsets = [0, 256], sizes = [128, 128], strides = [1, 1]} : vector<128x384xf32> to vector<128x128xf32>
    %c0_17 = arith.constant 0 : index
    %c0_18 = arith.constant 0 : index
    %35 = vector.load %arg9[%c0_17, %c0_18] : memref<128x128xbf16, #tpu.memory_space<vmem>>, vector<128x128xbf16>
    %cst_19 = arith.constant dense<0xFF800000> : vector<128xf32>
    %36 = vector.multi_reduction <maximumf>, %32, %cst_19 [1] : vector<128x128xf32> to vector<128xf32>
    %37 = vector.shape_cast %36 : vector<128xf32> to vector<128x1xf32>
    %38 = vector.broadcast %37 : vector<128x1xf32> to vector<128x128xf32>
    %39 = arith.subf %32, %38 : vector<128x128xf32>
    %40 = math.exp %39 : vector<128x128xf32>
    %41 = arith.truncf %40 : vector<128x128xf32> to vector<128x128xbf16>
    %cst_20 = arith.constant dense<0.000000e+00> : vector<128x128xf32>
    %42 = tpu.matmul %41, %35, %cst_20 {dimension_numbers = #tpu.dot_dimension_numbers<[1], [0], [0], [1], [0, 0, 1, 1], [], []>} : vector<128x128xbf16>, vector<128x128xbf16>, vector<128x128xf32> -> vector<128x128xf32>
    %43 = tpu.reciprocal %42 {approx = true} : vector<128x128xf32> -> vector<128x128xf32>
    %44 = arith.mulf %40, %43 : vector<128x128xf32>
    %cst_21 = arith.constant 0.176776692 : f32
    %45 = vector.broadcast %cst_21 : f32 to vector<128x128xf32>
    %46 = arith.mulf %44, %45 : vector<128x128xf32>
    %cst_22 = arith.constant dense<0xFF800000> : vector<128xf32>
    %47 = vector.multi_reduction <maximumf>, %33, %cst_22 [0] : vector<128x128xf32> to vector<128xf32>
    %48 = vector.shape_cast %47 : vector<128xf32> to vector<1x128xf32>
    %49 = vector.broadcast %48 : vector<1x128xf32> to vector<128x128xf32>
    %50 = arith.subf %33, %49 : vector<128x128xf32>
    %51 = math.exp %50 : vector<128x128xf32>
    %cst_23 = arith.constant dense<0.000000e+00> : vector<128xf32>
    %52 = vector.multi_reduction <add>, %51, %cst_23 [0] : vector<128x128xf32> to vector<128xf32>
    %53 = vector.shape_cast %52 : vector<128xf32> to vector<1x128xf32>
    %54 = tpu.reciprocal %53 {approx = true} : vector<1x128xf32> -> vector<1x128xf32>
    %55 = vector.broadcast %54 : vector<1x128xf32> to vector<128x128xf32>
    %56 = arith.mulf %51, %55 : vector<128x128xf32>
    %57 = arith.truncf %56 : vector<128x128xf32> to vector<128x128xbf16>
    %58 = arith.truncf %34 : vector<128x128xf32> to vector<128x128xbf16>
    "tpu.trace_start"() <{level = 10 : i32, message = "nd,ne->de"}> : () -> ()
    %cst_24 = arith.constant dense<0.000000e+00> : vector<128x128xf32>
    %59 = tpu.matmul %57, %58, %cst_24 {dimension_numbers = #tpu.dot_dimension_numbers<[0], [0], [1], [1], [0, 1, 1, 1], [], []>} : vector<128x128xbf16>, vector<128x128xbf16>, vector<128x128xf32> -> vector<128x128xf32>
    "tpu.trace_stop"() : () -> ()
    %60 = arith.extf %35 : vector<128x128xbf16> to vector<128x128xf32>
    %61 = arith.mulf %59, %60 : vector<128x128xf32>
    %62 = arith.truncf %46 : vector<128x128xf32> to vector<128x128xbf16>
    %63 = arith.truncf %61 : vector<128x128xf32> to vector<128x128xbf16>
    %cst_25 = arith.constant dense<0.000000e+00> : vector<128x128xf32>
    %64 = tpu.matmul %62, %63, %cst_25 {dimension_numbers = #tpu.dot_dimension_numbers<[1], [0], [0], [1], [0, 0, 1, 1], [], []>} : vector<128x128xbf16>, vector<128x128xbf16>, vector<128x128xf32> -> vector<128x128xf32>
    %65 = arith.truncf %64 : vector<128x128xf32> to vector<128x128xbf16>
    %c0_26 = arith.constant 0 : index
    %c0_27 = arith.constant 0 : index
    %66 = vector.load %arg8[%c0_26, %c0_27] : memref<128x128xbf16, #tpu.memory_space<vmem>>, vector<128x128xbf16>
    %cst_28 = arith.constant dense<0.000000e+00> : vector<128x128xf32>
    %67 = tpu.matmul %65, %66, %cst_28 {dimension_numbers = #tpu.dot_dimension_numbers<[1], [0], [0], [1], [0, 0, 1, 1], [], []>} : vector<128x128xbf16>, vector<128x128xbf16>, vector<128x128xf32> -> vector<128x128xf32>
    %c0_29 = arith.constant 0 : index
    %c0_30 = arith.constant 0 : index
    %68 = vector.load %arg10[%c0_29, %c0_30] : memref<1x128xf32, #tpu.memory_space<vmem>>, vector<1x128xf32>
    %cst_31 = arith.constant dense<0.000000e+00> : vector<128xf32>
    %69 = vector.multi_reduction <add>, %67, %cst_31 [1] : vector<128x128xf32> to vector<128xf32>
    %70 = vector.shape_cast %69 : vector<128xf32> to vector<128x1xf32>
    %cst_32 = arith.constant 1.280000e+02 : f32
    %71 = vector.broadcast %cst_32 : f32 to vector<128x1xf32>
    %72 = arith.divf %70, %71 : vector<128x1xf32>
    %73 = vector.broadcast %72 : vector<128x1xf32> to vector<128x128xf32>
    %74 = arith.subf %67, %73 : vector<128x128xf32>
    %75 = arith.mulf %74, %74 : vector<128x128xf32>
    %cst_33 = arith.constant dense<0.000000e+00> : vector<128xf32>
    %76 = vector.multi_reduction <add>, %75, %cst_33 [1] : vector<128x128xf32> to vector<128xf32>
    %77 = vector.shape_cast %76 : vector<128xf32> to vector<128x1xf32>
    %cst_34 = arith.constant 1.280000e+02 : f32
    %78 = vector.broadcast %cst_34 : f32 to vector<128x1xf32>
    %79 = arith.divf %77, %78 : vector<128x1xf32>
    %cst_35 = arith.constant 9.99999974E-6 : f32
    %80 = vector.broadcast %cst_35 : f32 to vector<128x1xf32>
    %81 = arith.addf %79, %80 : vector<128x1xf32>
    %82 = math.rsqrt %81 : vector<128x1xf32>
    %83 = vector.broadcast %82 : vector<128x1xf32> to vector<128x128xf32>
    %84 = arith.mulf %74, %83 : vector<128x128xf32>
    %85 = vector.broadcast %68 : vector<1x128xf32> to vector<128x128xf32>
    %86 = arith.mulf %84, %85 : vector<128x128xf32>
    %c0_36 = arith.constant 0 : index
    %c0_37 = arith.constant 0 : index
    %c0_38 = arith.constant 0 : index
    %87 = vector.load %arg11[%c0_36, %c0_37, %c0_38] : memref<1x128x128xf32, #tpu.memory_space<vmem>>, vector<1x128x128xf32>
    %88 = vector.shape_cast %87 : vector<1x128x128xf32> to vector<128x128xf32>
    %89 = vector.shape_cast %86 : vector<128x128xf32> to vector<1x128x128xf32>
    tpu.vector_store %arg11[%c0_36, %c0_37, %c0_38], %89 {strides = array<i32>} : memref<1x128x128xf32, #tpu.memory_space<vmem>>, vector<1x128x128xf32>,
    return
  }
  func.func @transform_0(%arg0: i32) -> (i32, i32, i32) {
    %c0_i32 = arith.constant 0 : i32
    %c0_i32_0 = arith.constant 0 : i32
    %c0_i32_1 = arith.constant 0 : i32
    return %arg0, %c0_i32, %c0_i32_0 : i32, i32, i32
  }
  func.func @transform_1(%arg0: i32) -> (i32, i32, i32) {
    %c0_i32 = arith.constant 0 : i32
    %c0_i32_0 = arith.constant 0 : i32
    %c0_i32_1 = arith.constant 0 : i32
    return %arg0, %c0_i32, %c0_i32_0 : i32, i32, i32
  }
  func.func @transform_2(%arg0: i32) -> (i32, i32, i32) {
    %c0_i32 = arith.constant 0 : i32
    %c0_i32_0 = arith.constant 0 : i32
    %c0_i32_1 = arith.constant 0 : i32
    return %arg0, %c0_i32, %c0_i32_0 : i32, i32, i32
  }
  func.func @transform_3(%arg0: i32) -> (i32, i32) {
    %c0_i32 = arith.constant 0 : i32
    %c0_i32_0 = arith.constant 0 : i32
    %c0_i32_1 = arith.constant 0 : i32
    return %c0_i32, %c0_i32_0 : i32, i32
  }
  func.func @transform_4(%arg0: i32) -> (i32, i32) {
    %c0_i32 = arith.constant 0 : i32
    %c0_i32_0 = arith.constant 0 : i32
    %c0_i32_1 = arith.constant 0 : i32
    return %c0_i32, %c0_i32_0 : i32, i32
  }
  func.func @transform_5(%arg0: i32) -> (i32, i32) {
    %c0_i32 = arith.constant 0 : i32
    %c0_i32_0 = arith.constant 0 : i32
    %c0_i32_1 = arith.constant 0 : i32
    return %c0_i32, %c0_i32_0 : i32, i32
  }
  func.func @transform_6(%arg0: i32) -> (i32, i32) {
    %c0_i32 = arith.constant 0 : i32
    %c0_i32_0 = arith.constant 0 : i32
    %c0_i32_1 = arith.constant 0 : i32
    return %c0_i32, %c0_i32_0 : i32, i32
  }
  func.func @transform_7(%arg0: i32) -> (i32, i32) {
    %c0_i32 = arith.constant 0 : i32
    %c0_i32_0 = arith.constant 0 : i32
    %c0_i32_1 = arith.constant 0 : i32
    return %c0_i32, %c0_i32_0 : i32, i32
  }
  func.func @transform_8(%arg0: i32) -> (i32, i32) {
    %c0_i32 = arith.constant 0 : i32
    %c0_i32_0 = arith.constant 0 : i32
    %c0_i32_1 = arith.constant 0 : i32
    return %c0_i32, %c0_i32_0 : i32, i32
  }
  func.func @transform_9(%arg0: i32) -> (i32, i32) {
    %c0_i32 = arith.constant 0 : i32
    %c0_i32_0 = arith.constant 0 : i32
    %c0_i32_1 = arith.constant 0 : i32
    return %c0_i32, %c0_i32_0 : i32, i32
  }
  func.func @transform_10(%arg0: i32) -> (i32, i32, i32) {
    %c0_i32 = arith.constant 0 : i32
    %c0_i32_0 = arith.constant 0 : i32
    %c0_i32_1 = arith.constant 0 : i32
    return %arg0, %c0_i32, %c0_i32_0 : i32, i32, i32
  }
}

</mosaic_0001>

<bundles_post_ra>
// kernel: linear_attention.1
= control target key start
LH: loop header
LB: loop body
LE: loop exit
PB: predicated region body
PF: predicated region fallthrough
CT: control target
= control target key end

     0   :  { %15 = vsyncpa [#allocation3], 0  ;;  %s3792_s0 = inlined_call_operand.vmem [shape: f32[2,128,128], index: 0, kind: input, shape index: {}]   ;;  %s3793_s1 = inlined_call_operand.vmem [shape: f32[2,1,128], index: 1, kind: input, shape index: {}]   ;;  %s3794_s2 = inlined_call_operand.vmem [shape: f32[2,1,128], index: 2, kind: input, shape index: {}]   ;;  %s3795_s3 = inlined_call_operand.vmem [shape: f32[1,128], index: 3, kind: input, shape index: {}]   ;;  %s3796_s4 = inlined_call_operand.vmem [shape: f32[1,128], index: 4, kind: input, shape index: {}, may-alias: {4,5}]   ;;  %s3797_s5 = inlined_call_operand.vmem [shape: f32[1,128], index: 5, kind: input, shape index: {}, may-alias: {4,5}]   ;;  %s3798_s6 = inlined_call_operand.vmem [shape: bf16[128,384], index: 6, kind: input, shape index: {}]   ;;  %s3799_s7 = inlined_call_operand.vmem [shape: bf16[128,128], index: 7, kind: input, shape index: {}]   ;;  %s3800_s8 = inlined_call_operand.vmem [shape: bf16[128,128], index: 8, kind: input, shape index: {}]   ;;  %s3801_s9 = inlined_call_operand.vmem [shape: f32[1,128], index: 9, kind: input, shape index: {}]   ;;  %s3802_s10 = inlined_call_operand.hbm [shape: f32[2,128,128], index: 10, kind: output, shape index: {}]  }
   0x1   :  { %17 = vsyncpa [#allocation3 + $0x1], 0  ;;  %s2880_s4 = smov 0   ;;  %s2882_s5 = smov 0  }
   0x2   :  { %s2884_s13 = smov 0   ;;  %s2886_s14 = smov 0  }
   0x3 LB: > { %s2901_s15 = sadd.s32 4294967295, %s2819_s14   ;;  %s2183_s16 = sadd.s32 4294967294, %s2819_s14   ;;  %s2819_s14 = sphi %s2886_s14, %s3808_s14   ;;  %s2815_s13 = sphi %s2884_s13, %s3807_s13   ;;  %s2811_s5 = sphi %s2882_s5, %s3806_s5   ;;  %s2807_s4 = sphi %s2880_s4, %s3805_s4  }
   0x4   : > { %s2905_s17 = sadd.s32 1, %s2819_s14   ;;  %s255_s18 = sadd.s32 1, %s2815_s13 }
   0x5   : > { %s252_s19 = ssub.s32 %s2819_s14, %s2905_s17  ;;  %p265_p0 = scmp.ne.s32.totalorder %s2815_s13, %s2811_s5 }
   0x6   : > { %p253_p1 = scmp.eq.s32.totalorder %s252_s19, 0  ;;  %p266_p2 = scmp.eq.s32.totalorder %s2901_s15, 1 }
   0x7   : > { %p271_p3 = scmp.ne.s32.totalorder %s2811_s5, %s2807_s4  ;;  %p272_p4 = scmp.eq.s32.totalorder %s2183_s16, 1 }
   0x8   : > { %s2916_s20 = scalar_select %p253_p1, %s2815_s13, %s255_s18  }
   0x9   : > { %p2918_p5 = por %p266_p2, %p265_p0  ;;  %p2922_p6 = por %p272_p4, %p271_p3 }
   0xa   : > { %p2186_p7 = scmp.ge.s32.totalorder %s2819_s14, 1  ;;  %p331_p8 = scmp.lt.s32.totalorder %s2819_s14, 3 }
   0xc   : > { %p332_p9 = pnand %p2186_p7, %p331_p8 }
   0xd   : > { %p375_p10 = scmp.lt.s32.totalorder (!%p332_p9), %s2901_s15, 1  ;;  %v2539_v16 = vld [vmem:[%s3798_s6 + $0x4] ss:$12 sps:$4 sm:$0xff] (!%p332_p9)   ;;  %v2541_v17 = vld [vmem:[%s3798_s6] ss:$12 sps:$4 sm:$0xff] (!%p332_p9)   ;;  %s372_s29 = sand.u32 (!%p332_p9), 1, %s2811_s5  }
   0xe   : > { %335 = sbr.rel (%p332_p9) target bundleno = 1881 (0x759), region = 60  ;;  %817 = vmatprep.subr.bf16.mxu0 (!%p332_p9), %v2539_v16  ;;  %v2542_v58 = vld [vmem:[%s3798_s6 + $0x1c] ss:$12 sps:$4 sm:$0xff] (!%p332_p9)   ;;  %v2545_v63 = vld [vmem:[%s3798_s6 + $0x18] ss:$12 sps:$4 sm:$0xff] (!%p332_p9)   ;;  %s2240_s18 = sshll.u32 (!%p332_p9), %s2901_s15, 11 }
   0xf   : > { %818 = vmatpush1.bf16.msra.mxu0 (!%p332_p9), %v2541_v17  ;;  %v2544_v59 = vld [vmem:[%s3798_s6 + $0x8] ss:$12 sps:$4 sm:$0xff] (!%p332_p9)   ;;  %s3743_s25 = scalar_lea.hbm (!%p332_p9), %s3802_s10, %s2240_s18 }
  0x10   : > { %819 = vmatprep.subr.bf16.mxu0 (!%p332_p9), %v2542_v58  ;;  %2321 = vmatprep.subr.bf16.mxu1 (!%p332_p9), %v2544_v59 }
  0x11   : > { %2322 = vmatpush3.bf16.msra.mxu1 (!%p332_p9), %v2544_v59 }
  0x13   : > { %820 = vmatpush1.bf16.msra.mxu0 (!%p332_p9), %v2545_v63 }
  0x15   : > { %s2930_s23 = scalar_select %p375_p10, %s2901_s15, 1 }
  0x16   : > { %s3751_s15 = scalar_lea.sflag [#allocation3], %s372_s29 }
  0x17   : > { %s2239_s24 = sshll.u32 %s2930_s23, 7  ;;  %s382_s30 = scalar_lea.vmem %s3793_s1, %s2930_s23 }
  0x18   : > { %s379_s27 = scalar_lea.vmem %s3792_s0, %s2239_s24  ;;  %s385_s19 = scalar_lea.vmem %s3794_s2, %s2930_s23 }
  0x19   : > { %v387_v0 = vld [vmem:[%s379_s27] sm:$0xff]  ;;  %v389_v1 = vld [vmem:[%s379_s27 + $0x10] sm:$0xff]  ;;  %v388_v2 = vld [vmem:[%s379_s27 + $0x8] sm:$0xff] }
  0x1a   : > { %404 = vadd.xlane.f32.xlu0 %v387_v0  ;;  %408 = vadd.xlane.f32.xlu1 %v389_v1  ;;  %v390_v3 = vld [vmem:[%s379_s27 + $0x18] sm:$0xff]  ;;  %v391_v4 = vld [vmem:[%s379_s27 + $0x20] sm:$0xff]  ;;  %v392_v5 = vld [vmem:[%s379_s27 + $0x28] sm:$0xff] }
  0x1b   : > { %v393_v6 = vld [vmem:[%s379_s27 + $0x30] sm:$0xff]  ;;  %v394_v7 = vld [vmem:[%s379_s27 + $0x38] sm:$0xff]  ;;  %v395_v8 = vld [vmem:[%s379_s27 + $0x40] sm:$0xff] }
  0x1c   : > { %v2936_v9 = vld [vmem:[%s379_s27 + $0x48] sm:$0xff]  ;;  %v2939_v10 = vld [vmem:[%s379_s27 + $0x50] sm:$0xff]  ;;  %v2941_v11 = vld [vmem:[%s379_s27 + $0x58] sm:$0xff] }
  0x1d   : > { %v2945_v12 = vld [vmem:[%s379_s27 + $0x60] sm:$0xff]  ;;  %v2947_v13 = vld [vmem:[%s379_s27 + $0x68] sm:$0xff]  ;;  %v2951_v14 = vld [vmem:[%s379_s27 + $0x70] sm:$0xff] }
  0x1e   : > { %406 = vadd.xlane.f32.xlu0 %v388_v2  ;;  %410 = vadd.xlane.f32.xlu1 %v390_v3  ;;  %v2953_v15 = vld [vmem:[%s379_s27 + $0x78] sm:$0xff]  ;;  %s2822_s27 = smov [#allocation2]  }
  0x1f   : > { %s2761_s28 = sshll.u32 %s2822_s27, 4  ;;  %s2762_s28 = int_to_ptr.vmem [resolvable:$false] %s2761_s28 }
  0x22   : > { %412 = vadd.xlane.f32.xlu0 %v391_v4  ;;  %414 = vadd.xlane.f32.xlu1 %v392_v5 }
  0x26   : > { %416 = vadd.xlane.f32.xlu0 %v393_v6  ;;  %418 = vadd.xlane.f32.xlu1 %v394_v7 }
  0x2a   : > { %420 = vadd.xlane.f32.xlu0 %v395_v8  ;;  %422 = vadd.xlane.f32.xlu1 %v2936_v9 }
  0x2e   : > { %424 = vadd.xlane.f32.xlu0 %v2939_v10  ;;  %426 = vadd.xlane.f32.xlu1 %v2941_v11 }
  0x32   : > { %428 = vadd.xlane.f32.xlu0 %v2945_v12  ;;  %430 = vadd.xlane.f32.xlu1 %v2947_v13 }
  0x36   : > { %432 = vadd.xlane.f32.xlu0 %v2951_v14  ;;  %434 = vadd.xlane.f32.xlu1 %v2953_v15 }
  0xa7   : > { %v405_v18 = vpop.xlane.xlu0 %404  ;;  %v409_v19 = vpop.xlane.xlu1 %408 }
  0xa8   : > { %v437_v20 = vmul.f32 0.0078125, %v405_v18  ;;  %v439_v21 = vmul.f32 0.0078125, %v409_v19 }
  0xaa   : > { %v2963_v22 = vsub.f32 %v387_v0, %v437_v20  ;;  %v2965_v23 = vsub.f32 %v389_v1, %v439_v21 }
  0xab   : > { %v407_v24 = vpop.xlane.xlu0 %406  ;;  %v411_v25 = vpop.xlane.xlu1 %410 }
  0xac   : > { %v438_v26 = vmul.f32 0.0078125, %v407_v24  ;;  %v469_v27 = vmul.f32 %v2963_v22, %v2963_v22  ;;  %v440_v28 = vmul.f32 0.0078125, %v411_v25  ;;  %v471_v31 = vmul.f32 %v2965_v23, %v2965_v23  ;;  %v2553_v25 = vld [vmem:[%s3798_s6 + $0x48] ss:$12 sps:$4 sm:$0xff]  }
  0xae   : > { %v2969_v29 = vsub.f32 %v388_v2, %v438_v26  ;;  %485 = vadd.xlane.f32.xlu0 %v469_v27  ;;  %v2971_v30 = vsub.f32 %v390_v3, %v440_v28 }
  0xaf   : > { %v413_v32 = vpop.xlane.xlu0 %412  ;;  %v415_v33 = vpop.xlane.xlu1 %414 }
  0xb0   : > { %v441_v34 = vmul.f32 0.0078125, %v413_v32  ;;  %v470_v35 = vmul.f32 %v2969_v29, %v2969_v29  ;;  %v442_v36 = vmul.f32 0.0078125, %v415_v33  ;;  %v472_v39 = vmul.f32 %v2971_v30, %v2971_v30  ;;  %v2556_v32 = vld [vmem:[%s3798_s6 + $0x50] ss:$12 sps:$4 sm:$0xff]  }
  0xb2   : > { %v2977_v37 = vsub.f32 %v391_v4, %v441_v34  ;;  %489 = vadd.xlane.f32.xlu0 %v471_v31  ;;  %487 = vadd.xlane.f32.xlu1 %v470_v35  ;;  %v2979_v38 = vsub.f32 %v392_v5, %v442_v36  ;;  %v2558_v34 = vld [vmem:[%s3798_s6 + $0x7c] ss:$12 sps:$4 sm:$0xff]   ;;  %v2561_v36 = vld [vmem:[%s3798_s6 + $0x78] ss:$12 sps:$4 sm:$0xff]  }
  0xb3   : > { %v417_v40 = vpop.xlane.xlu0 %416  ;;  %v419_v41 = vpop.xlane.xlu1 %418  ;;  %v2560_v35 = vld [vmem:[%s3798_s6 + $0x68] ss:$12 sps:$4 sm:$0xff]  }
  0xb4   : > { %v443_v42 = vmul.f32 0.0078125, %v417_v40  ;;  %v473_v43 = vmul.f32 %v2977_v37, %v2977_v37  ;;  %v444_v44 = vmul.f32 0.0078125, %v419_v41  ;;  %v474_v47 = vmul.f32 %v2979_v38, %v2979_v38  ;;  %v2564_v40 = vld [vmem:[%s3798_s6 + $0x80] ss:$12 sps:$4 sm:$0xff]   ;;  %v2565_v41 = vld [vmem:[%s3798_s6 + $0x90] ss:$12 sps:$4 sm:$0xff]  }
  0xb6   : > { %v2985_v45 = vsub.f32 %v393_v6, %v443_v42  ;;  %491 = vadd.xlane.f32.xlu1 %v472_v39  ;;  %493 = vadd.xlane.f32.xlu0 %v473_v43  ;;  %v2987_v46 = vsub.f32 %v394_v7, %v444_v44  ;;  %v2562_v39 = vld [vmem:[%s3798_s6 + $0x94] ss:$12 sps:$4 sm:$0xff]   ;;  %v2566_v42 = vld [vmem:[%s3798_s6 + $0xac] ss:$12 sps:$4 sm:$0xff]  }
  0xb7   : > { %v421_v48 = vpop.xlane.xlu0 %420  ;;  %v423_v49 = vpop.xlane.xlu1 %422  ;;  %v2568_v43 = vld [vmem:[%s3798_s6 + $0x98] ss:$12 sps:$4 sm:$0xff]   ;;  %v2569_v44 = vld [vmem:[%s3798_s6 + $0xa8] ss:$12 sps:$4 sm:$0xff]  }
  0xb8   : > { %v445_v50 = vmul.f32 0.0078125, %v421_v48  ;;  %v475_v51 = vmul.f32 %v2985_v45, %v2985_v45  ;;  %v446_v52 = vmul.f32 0.0078125, %v423_v49  ;;  %v476_v55 = vmul.f32 %v2987_v46, %v2987_v46 }
  0xb9   : > { %v2821_v48 = vmov 0  }
  0xba   : > { %v2993_v53 = vsub.f32 %v395_v8, %v445_v50  ;;  %495 = vadd.xlane.f32.xlu1 %v474_v47  ;;  %497 = vadd.xlane.f32.xlu0 %v475_v51  ;;  %v2996_v54 = vsub.f32 %v2936_v9, %v446_v52  ;;  %v2546_v8 = vld [vmem:[%s3798_s6 + $0x34] ss:$12 sps:$4 sm:$0xff]   ;;  %v2570_v47 = vld [vmem:[%s3798_s6 + $0xb0] ss:$12 sps:$4 sm:$0xff]  }
  0xbb   : > { %v425_v56 = vpop.xlane.xlu0 %424  ;;  %v427_v57 = vpop.xlane.xlu1 %426  ;;  %v2548_v9 = vld [vmem:[%s3798_s6 + $0x20] ss:$12 sps:$4 sm:$0xff]   ;;  %821 = vmatprep.subr.bf16.mxu0 %v2546_v8  ;;  %849 = vmatprep.mubr.bf16.mxu0 %v2821_v48 }
  0xbc   : > { %v447_v60 = vmul.f32 0.0078125, %v425_v56  ;;  %v477_v61 = vmul.f32 %v2993_v53, %v2993_v53  ;;  %v448_v62 = vmul.f32 0.0078125, %v427_v57  ;;  %v478_v2 = vmul.f32 %v2996_v54, %v2996_v54  ;;  %2323 = vmatprep.subr.bf16.mxu1 %v2548_v9 }
  0xbd   : > { %2324 = vmatpush3.bf16.msra.mxu1 %v2548_v9 }
  0xbe   : > { %v3012_v0 = vsub.f32 %v2939_v10, %v447_v60  ;;  %499 = vadd.xlane.f32.xlu1 %v476_v55  ;;  %501 = vadd.xlane.f32.xlu0 %v477_v61  ;;  %v3015_v1 = vsub.f32 %v2941_v11, %v448_v62  ;;  %v2549_v10 = vld [vmem:[%s3798_s6 + $0x30] ss:$12 sps:$4 sm:$0xff]  }
  0xbf   : > { %v429_v3 = vpop.xlane.xlu0 %428  ;;  %v431_v4 = vpop.xlane.xlu1 %430  ;;  %822 = vmatpush1.bf16.msra.mxu0 %v2549_v10 }
  0xc0   : > { %v449_v5 = vmul.f32 0.0078125, %v429_v3  ;;  %v479_v6 = vmul.f32 %v3012_v0, %v3012_v0  ;;  %v450_v7 = vmul.f32 0.0078125, %v431_v4  ;;  %v480_v17 = vmul.f32 %v3015_v1, %v3015_v1 }
  0xc2   : > { %v3031_v11 = vsub.f32 %v2945_v12, %v449_v5  ;;  %503 = vadd.xlane.f32.xlu1 %v478_v2  ;;  %505 = vadd.xlane.f32.xlu0 %v479_v6  ;;  %v3034_v16 = vsub.f32 %v2947_v13, %v450_v7  ;;  %v2550_v12 = vld [vmem:[%s3798_s6 + $0x4c] ss:$12 sps:$4 sm:$0xff]  }
  0xc3   : > { %v433_v18 = vpop.xlane.xlu0 %432  ;;  %v435_v19 = vpop.xlane.xlu1 %434  ;;  %v2552_v13 = vld [vmem:[%s3798_s6 + $0x38] ss:$12 sps:$4 sm:$0xff]   ;;  %823 = vmatprep.subr.bf16.mxu0 %v2550_v12  ;;  %v3111_v12 = vld [vmem:[%s382_s30] ss:$0 sm:$0xff]  ;;  %s2187_s30 = sshll.u32 %s372_s29, 7 }
  0xc4   : > { %v451_v20 = vmul.f32 0.0078125, %v433_v18  ;;  %v481_v21 = vmul.f32 %v3031_v11, %v3031_v11  ;;  %v452_v24 = vmul.f32 0.0078125, %v435_v19  ;;  %v482_v28 = vmul.f32 %v3034_v16, %v3034_v16  ;;  %2325 = vmatprep.subr.bf16.mxu1 %v2552_v13  ;;  %824 = vmatpush1.bf16.msra.mxu0 %v2553_v25  ;;  %s3692_s16 = scalar_lea.vmem [#allocation2], %s2187_s30  ;;  %s2763_s30 = scalar_lea.vmem %s2762_s28, 4096 }
  0xc5   : > { %2326 = vmatpush3.bf16.msra.mxu1 %v2552_v13 }
  0xc6   : > { %v3050_v26 = vsub.f32 %v2951_v14, %v451_v20  ;;  %507 = vadd.xlane.f32.xlu1 %v480_v17  ;;  %509 = vadd.xlane.f32.xlu0 %v481_v21  ;;  %v3053_v27 = vsub.f32 %v2953_v15, %v452_v24  ;;  %v2554_v14 = vld [vmem:[%s3798_s6 + $0x64] ss:$12 sps:$4 sm:$0xff]   ;;  %v2557_v15 = vld [vmem:[%s3798_s6 + $0x60] ss:$12 sps:$4 sm:$0xff]  }
  0xc7   : > { %825 = vmatprep.subr.bf16.mxu0 %v2554_v14  ;;  %2327 = vmatprep.subr.bf16.mxu1 %v2556_v32  ;;  %v3108_v17 = vld [vmem:[%s3795_s3] ss:$0 sm:$0xff] }
  0xc8   : > { %v483_v31 = vmul.f32 %v3050_v26, %v3050_v26  ;;  %v484_v33 = vmul.f32 %v3053_v27, %v3053_v27  ;;  %826 = vmatpush1.bf16.msra.mxu0 %v2557_v15 }
  0xc9   : > { %2328 = vmatpush3.bf16.msra.mxu1 %v2556_v32  ;;  %827 = vmatprep.subr.bf16.mxu0 %v2558_v34 }
  0xca   : > { %511 = vadd.xlane.f32.xlu1 %v482_v28  ;;  %513 = vadd.xlane.f32.xlu0 %v483_v31 }
  0xcb   : > { %2329 = vmatprep.subr.bf16.mxu1 %v2560_v35 }
  0xcc   : > { %828 = vmatpush1.bf16.msra.mxu0 %v2561_v36  ;;  %v3120_v36 = vld [vmem:[%s385_s19] ss:$0 sm:$0xff]  ;;  %s2103_s19 = sshll.u32 %s3692_s16, 4  ;;  %s3745_s19 = int_to_ptr.vmem [resolvable:$true] %s2103_s19 }
  0xcd   : > { %2330 = vmatpush3.bf16.msra.mxu1 %v2560_v35  ;;  %829 = vmatprep.subr.bf16.mxu0 %v2562_v39  ;;  %s2757_s26 = scalar_lea.vmem %s3745_s19, 2048  ;;  %p2764_p0 = scmp.lt.s32.totalorder %s3745_s19, %s2762_s28 }
  0xce   : > { %515 = vadd.xlane.f32.xlu1 %v484_v33  ;;  %2331 = vmatprep.subr.bf16.mxu1 %v2564_v40  ;;  %p2758_p11 = scmp.ne.s32.totalorder %s3745_s19, %s2757_s26  ;;  %p2765_p1 = scmp.lt.s32.totalorder %s2763_s30, %s2757_s26 }
  0xd0   : > { %830 = vmatpush1.bf16.msra.mxu0 %v2565_v41  ;;  %p2759_p12 = pnand %p2758_p11, %p2918_p5  ;;  %p2766_p2 = por %p2765_p1, %p2764_p0 }
  0xd1   : > { %2332 = vmatpush3.bf16.msra.mxu1 %v2564_v40  ;;  %831 = vmatprep.subr.bf16.mxu0 %v2566_v42 }
  0xd2   : > { %2333 = vmatprep.subr.bf16.mxu1 %v2568_v43  ;;  %p2760_p13 = pneg %p2759_p12 }
  0xd4   : > { %832 = vmatpush1.bf16.msra.mxu0 %v2569_v44  ;;  %p2767_p3 = pnand %p2766_p2, %p2760_p13 }
  0xd5   : > { %2334 = vmatpush3.bf16.msra.mxu1 %v2568_v43 }
  0xd6   : > { %2335 = vmatprep.subr.bf16.mxu1 %v2570_v47 }
  0xd9   : > { %2336 = vmatpush3.bf16.msra.mxu1 %v2570_v47 }
 0x13b   : > { %v486_v49 = vpop.xlane.xlu0 %485 }
 0x13c   : > { %v517_v50 = vmul.f32 0.0078125, %v486_v49 }
 0x13e   : > { %v533_v51 = vadd.f32 1e-05, %v517_v50 }
 0x13f   : > { %v488_v52 = vpop.xlane.xlu1 %487  ;;  %v490_v55 = vpop.xlane.xlu0 %489 }
 0x140   : > { %2595 = vrsqrt.f32 %v533_v51  ;;  %v518_v56 = vmul.f32 0.0078125, %v488_v52  ;;  %v519_v57 = vmul.f32 0.0078125, %v490_v55 }
 0x142   : > { %v534_v58 = vadd.f32 1e-05, %v518_v56  ;;  %v535_v59 = vadd.f32 1e-05, %v519_v57 }
 0x143   : > { %v492_v60 = vpop.xlane.xlu1 %491  ;;  %v494_v61 = vpop.xlane.xlu0 %493 }
 0x144   : > { %2597 = vrsqrt.f32 %v534_v58  ;;  %v520_v62 = vmul.f32 0.0078125, %v492_v60  ;;  %v521_v63 = vmul.f32 0.0078125, %v494_v61 }
 0x145   : > { %2599 = vrsqrt.f32 %v535_v59 }
 0x146   : > { %v536_v2 = vadd.f32 1e-05, %v520_v62  ;;  %v537_v3 = vadd.f32 1e-05, %v521_v63 }
 0x147   : > { %v496_v4 = vpop.xlane.xlu1 %495  ;;  %v498_v5 = vpop.xlane.xlu0 %497 }
 0x148   : > { %2601 = vrsqrt.f32 %v536_v2  ;;  %v522_v6 = vmul.f32 0.0078125, %v496_v4  ;;  %v523_v7 = vmul.f32 0.0078125, %v498_v5 }
 0x149   : > { %2603 = vrsqrt.f32 %v537_v3 }
 0x14a   : > { %v2596_v8 = vpop.eup %2595  ;;  %v538_v9 = vadd.f32 1e-05, %v522_v6  ;;  %v539_v10 = vadd.f32 1e-05, %v523_v7 }
 0x14b   : > { %v500_v18 = vpop.xlane.xlu1 %499  ;;  %v502_v19 = vpop.xlane.xlu0 %501  ;;  %v565_v20 = vmul.f32 %v2596_v8, %v2963_v22 }
 0x14c   : > { %2605 = vrsqrt.f32 %v538_v9  ;;  %v524_v21 = vmul.f32 0.0078125, %v500_v18  ;;  %v525_v24 = vmul.f32 0.0078125, %v502_v19 }
 0x14d   : > { %2607 = vrsqrt.f32 %v539_v10  ;;  %v587_v13 = vmul.f32 %v3108_v17, %v565_v20 }
 0x14e   : > { %v2598_v25 = vpop.eup %2597  ;;  %v540_v28 = vadd.f32 1e-05, %v524_v21  ;;  %v541_v31 = vadd.f32 1e-05, %v525_v24 }
 0x14f   : > { %v2600_v14 = vpop.eup %2599  ;;  %v504_v32 = vpop.xlane.xlu1 %503  ;;  %v566_v22 = vmul.f32 %v2598_v25, %v2969_v29  ;;  %v610_v33 = vmul.f32 %v3111_v12, %v587_v13 }
 0x150   : > { %v506_v15 = vpop.xlane.xlu0 %505  ;;  %2609 = vrsqrt.f32 %v540_v28  ;;  %v526_v34 = vmul.f32 0.0078125, %v504_v32  ;;  %v567_v39 = vmul.f32 %v2600_v14, %v2965_v23 }
 0x151   : > { %v527_v35 = vmul.f32 0.0078125, %v506_v15  ;;  %2611 = vrsqrt.f32 %v541_v31  ;;  %v588_v40 = vmul.f32 %v3108_v17, %v566_v22  ;;  %v633_v51 = vadd.f32 %v3120_v36, %v610_v33 }
 0x152   : > { %v2602_v41 = vpop.eup %2601  ;;  %v542_v42 = vadd.f32 1e-05, %v526_v34  ;;  %v589_v44 = vmul.f32 %v3108_v17, %v567_v39 }
 0x153   : > { %v543_v43 = vadd.f32 1e-05, %v527_v35  ;;  %v2604_v47 = vpop.eup %2603  ;;  %v508_v49 = vpop.xlane.xlu1 %507  ;;  %v611_v50 = vmul.f32 %v3111_v12, %v588_v40  ;;  %v568_v52 = vmul.f32 %v2602_v41, %v2971_v30 }
 0x154   : > { %v510_v29 = vpop.xlane.xlu0 %509  ;;  %2613 = vrsqrt.f32 %v542_v42  ;;  %v528_v55 = vmul.f32 0.0078125, %v508_v49  ;;  %v612_v56 = vmul.f32 %v3111_v12, %v589_v44  ;;  %v569_v59 = vmul.f32 %v2604_v47, %v2977_v37 }
 0x155   : > { %v529_v23 = vmul.f32 0.0078125, %v510_v29  ;;  %2615 = vrsqrt.f32 %v543_v43  ;;  %v634_v57 = vadd.f32 %v3120_v36, %v611_v50  ;;  %v590_v58 = vmul.f32 %v3108_v17, %v568_v52 }
 0x156   : > { %v2606_v60 = vpop.eup %2605  ;;  %v544_v61 = vadd.f32 1e-05, %v528_v55  ;;  %v635_v63 = vadd.f32 %v3120_v36, %v612_v56  ;;  %v591_v7 = vmul.f32 %v3108_v17, %v569_v59 }
 0x157   : > { %v545_v62 = vadd.f32 1e-05, %v529_v23  ;;  %v2608_v2 = vpop.eup %2607  ;;  %v512_v3 = vpop.xlane.xlu1 %511  ;;  %v649_v4 = vpack.c.bf16 %v634_v57, %v633_v51  ;;  %v613_v5 = vmul.f32 %v3111_v12, %v590_v58  ;;  %v570_v6 = vmul.f32 %v2606_v60, %v2979_v38 }
 0x158   : > { %v514_v30 = vpop.xlane.xlu0 %513  ;;  %2617 = vrsqrt.f32 %v544_v61  ;;  %v530_v8 = vmul.f32 0.0078125, %v512_v3  ;;  %v571_v37 = vmul.f32 %v2608_v2, %v2985_v45  ;;  %v614_v19 = vmul.f32 %v3111_v12, %v591_v7 }
 0x159   : > { %v531_v9 = vmul.f32 0.0078125, %v514_v30  ;;  %2619 = vrsqrt.f32 %v545_v62  ;;  %850 = vmatmul.mubr.bf16.vlgmr.msra.gmra.mrb[0].mxu0 %v649_v4  ;;  %2337 = vmatprep.mubr.bf16.mxu1 %v649_v4  ;;  %v636_v10 = vadd.f32 %v3120_v36, %v613_v5  ;;  %v592_v18 = vmul.f32 %v3108_v17, %v570_v6 }
 0x15a   : > { %v2610_v20 = vpop.eup %2609  ;;  %v546_v21 = vadd.f32 1e-05, %v530_v8  ;;  %859 = vmatprep.mubr.bf16.mxu0 %v2821_v48  ;;  %v593_v38 = vmul.f32 %v3108_v17, %v571_v37  ;;  %v637_v22 = vadd.f32 %v3120_v36, %v614_v19 }
 0x15b   : > { %v547_v24 = vadd.f32 1e-05, %v531_v9  ;;  %v2612_v13 = vpop.eup %2611  ;;  %v516_v25 = vpop.xlane.xlu1 %515  ;;  %v650_v28 = vpack.c.bf16 %v636_v10, %v635_v63  ;;  %v615_v45 = vmul.f32 %v3111_v12, %v592_v18  ;;  %v572_v31 = vmul.f32 %v2610_v20, %v2987_v46 }
 0x15c   : > { %2621 = vrsqrt.f32 %v546_v21  ;;  %v532_v14 = vmul.f32 0.0078125, %v516_v25  ;;  %v616_v32 = vmul.f32 %v3111_v12, %v593_v38  ;;  %v573_v15 = vmul.f32 %v2612_v13, %v2993_v53 }
 0x15d   : > { %2623 = vrsqrt.f32 %v547_v24  ;;  %2338 = vmatmul.mubr.bf16.vlgmr.msra.gmra.mrb[0].mxu1 %v650_v28  ;;  %v638_v33 = vadd.f32 %v3120_v36, %v615_v45  ;;  %v594_v34 = vmul.f32 %v3108_v17, %v572_v31 }
 0x15e   : > { %v2614_v35 = vpop.eup %2613  ;;  %v548_v39 = vadd.f32 1e-05, %v532_v14  ;;  %v595_v40 = vmul.f32 %v3108_v17, %v573_v15  ;;  %v639_v53 = vadd.f32 %v3120_v36, %v616_v32 }
 0x15f   : > { %v2616_v41 = vpop.eup %2615  ;;  %v651_v46 = vpack.c.bf16 %v638_v33, %v637_v22  ;;  %v617_v42 = vmul.f32 %v3111_v12, %v594_v34  ;;  %v574_v43 = vmul.f32 %v2614_v35, %v2996_v54  ;;  %v3209_v22 = vld [vmem:[%s3800_s8] sm:$0xff]   ;;  %v3214_v33 = vld [vmem:[%s3800_s8 + $0x8] sm:$0xff]  }
 0x160   : > { %2625 = vrsqrt.f32 %v548_v39  ;;  %v575_v44 = vmul.f32 %v2616_v41, %v3012_v0  ;;  %v618_v29 = vmul.f32 %v3111_v12, %v595_v40  ;;  %2353 = vmatprep.subr.bf16.mxu1 %v3209_v22 }
 0x161   : > { %860 = vmatmul.mubr.bf16.gmra.mrb[4].mxu0 %v650_v28  ;;  %2341 = vmatprep.mubr.bf16.mxu1 %v651_v46  ;;  %v640_v47 = vadd.f32 %v3120_v36, %v617_v42  ;;  %v596_v49 = vmul.f32 %v3108_v17, %v574_v43 }
 0x162   : > { %v2618_v50 = vpop.eup %2617  ;;  %869 = vmatprep.mubr.bf16.mxu0 %v2821_v48  ;;  %v597_v51 = vmul.f32 %v3108_v17, %v575_v44  ;;  %v641_v57 = vadd.f32 %v3120_v36, %v618_v29  ;;  %2354 = vmatpush3.bf16.msra.mxu1 %v3209_v22 }
 0x163   : > { %v2620_v52 = vpop.eup %2619  ;;  %v652_v54 = vpack.c.bf16 %v640_v47, %v639_v53  ;;  %v619_v55 = vmul.f32 %v3111_v12, %v596_v49  ;;  %v576_v23 = vmul.f32 %v2618_v50, %v3015_v1  ;;  %2355 = vmatprep.subr.bf16.mxu1 %v3214_v33 }
 0x164   : > { %v620_v0 = vmul.f32 %v3111_v12, %v597_v51  ;;  %v577_v56 = vmul.f32 %v2620_v52, %v3031_v11  ;;  %v3240_v52 = vld [vmem:[%s3800_s8 + $0x10] sm:$0xff]  }
 0x165   : > { %2342 = vmatmul.mubr.bf16.gmra.mrb[4].mxu1 %v652_v54  ;;  %v642_v58 = vadd.f32 %v3120_v36, %v619_v55  ;;  %v598_v59 = vmul.f32 %v3108_v17, %v576_v23 }
 0x166   : > { %v2622_v60 = vpop.eup %2621  ;;  %v599_v61 = vmul.f32 %v3108_v17, %v577_v56  ;;  %v643_v3 = vadd.f32 %v3120_v36, %v620_v0  ;;  %2356 = vmatpush3.bf16.msra.mxu1 %v3214_v33 }
 0x167   : > { %v2624_v62 = vpop.eup %2623  ;;  %v653_v63 = vpack.c.bf16 %v642_v58, %v641_v57  ;;  %v621_v2 = vmul.f32 %v3111_v12, %v598_v59  ;;  %v578_v1 = vmul.f32 %v2622_v60, %v3034_v16  ;;  %2357 = vmatprep.subr.bf16.mxu1 %v3240_v52 }
 0x168   : > { %v579_v11 = vmul.f32 %v2624_v62, %v3050_v26  ;;  %v622_v5 = vmul.f32 %v3111_v12, %v599_v61 }
 0x169   : > { %870 = vmatmul.mubr.bf16.gmra.mrb[8].mxu0 %v651_v46  ;;  %2345 = vmatprep.mubr.bf16.mxu1 %v653_v63  ;;  %v644_v30 = vadd.f32 %v3120_v36, %v621_v2  ;;  %v600_v4 = vmul.f32 %v3108_v17, %v578_v1  ;;  %v3268_v1 = vld [vmem:[%s3800_s8 + $0x20] sm:$0xff]  }
 0x16a   : > { %v2626_v6 = vpop.eup %2625  ;;  %879 = vmatprep.mubr.bf16.mxu0 %v2821_v48  ;;  %v601_v7 = vmul.f32 %v3108_v17, %v579_v11  ;;  %v645_v26 = vadd.f32 %v3120_v36, %v622_v5  ;;  %2358 = vmatpush3.bf16.msra.mxu1 %v3240_v52 }
 0x16b   : > { %v654_v8 = vpack.c.bf16 %v644_v30, %v643_v3  ;;  %v623_v16 = vmul.f32 %v3111_v12, %v600_v4  ;;  %v580_v9 = vmul.f32 %v2626_v6, %v3053_v27  ;;  %v3273_v3 = vld [vmem:[%s3800_s8 + $0x28] sm:$0xff]  }
 0x16c   : > { %v624_v18 = vmul.f32 %v3111_v12, %v601_v7 }
 0x16d   : > { %2346 = vmatmul.mubr.bf16.gmra.mrb[8].mxu1 %v654_v8  ;;  %v646_v37 = vadd.f32 %v3120_v36, %v623_v16  ;;  %v602_v10 = vmul.f32 %v3108_v17, %v580_v9 }
 0x16e   : > { %v647_v21 = vadd.f32 %v3120_v36, %v624_v18 }
 0x16f   : > { %v655_v19 = vpack.c.bf16 %v646_v37, %v645_v26  ;;  %v625_v20 = vmul.f32 %v3111_v12, %v602_v10  ;;  %v3294_v37 = vld [vmem:[%s3800_s8 + $0x30] sm:$0xff]   ;;  %v3299_v10 = vld [vmem:[%s3800_s8 + $0x38] sm:$0xff]  }
 0x171   : > { %880 = vmatmul.mubr.bf16.gmra.mrb[12].mxu0 %v652_v54  ;;  %2349 = vmatprep.mubr.bf16.mxu1 %v655_v19  ;;  %v648_v24 = vadd.f32 %v3120_v36, %v625_v20  ;;  %v3245_v54 = vld [vmem:[%s3800_s8 + $0x18] sm:$0xff]  }
 0x172   : > { %889 = vmatprep.mubr.bf16.mxu0 %v2821_v48  ;;  %2359 = vmatprep.subr.bf16.mxu1 %v3245_v54 }
 0x173   : > { %v656_v27 = vpack.c.bf16 %v648_v24, %v647_v21  ;;  %2360 = vmatpush3.bf16.msra.mxu1 %v3245_v54 }
 0x174   : > { %2361 = vmatprep.subr.bf16.mxu1 %v3268_v1 }
 0x175   : > { %2350 = vmatmul.mubr.bf16.gmra.mrb[12].mxu1 %v656_v27 }
 0x177   : > { %2362 = vmatpush3.bf16.msra.mxu1 %v3268_v1 }
 0x178   : > { %2363 = vmatprep.subr.bf16.mxu1 %v3273_v3 }
 0x179   : > { %890 = vmatmul.mubr.bf16.gmra.mrb[16].mxu0 %v653_v63 }
 0x17a   : > { %899 = vmatprep.mubr.bf16.mxu0 %v2821_v48 }
 0x17b   : > { %2364 = vmatpush3.bf16.msra.mxu1 %v3273_v3 }
 0x17c   : > { %2365 = vmatprep.subr.bf16.mxu1 %v3294_v37 }
 0x17f   : > { %2366 = vmatpush3.bf16.msra.mxu1 %v3294_v37 }
 0x180   : > { %2367 = vmatprep.subr.bf16.mxu1 %v3299_v10 }
 0x181   : > { %900 = vmatmul.mubr.bf16.gmra.mrb[20].mxu0 %v654_v8 }
 0x182   : > { %909 = vmatprep.mubr.bf16.mxu0 %v2821_v48 }
 0x183   : > { %2368 = vmatpush3.bf16.msra.mxu1 %v3299_v10 }
 0x189   : > { %910 = vmatmul.mubr.bf16.gmra.mrb[24].mxu0 %v655_v19 }
 0x18a   : > { %919 = vmatprep.mubr.bf16.mxu0 %v2821_v48 }
 0x191   : > { %920 = vmatmul.mubr.bf16.gmra.mrb[28].mxu0 %v656_v27 }
 0x22c   : > { %v3189_v17 = vpop.f32.mrb[0].mxu0 }
 0x22d   : > { %1043 = vmax.xlane.f32.xlu0 %v3189_v17  ;;  %v3192_v12 = vpop.f32.mrb[1].mxu0 }
 0x22e   : > { %v3194_v36 = vpop.f32.mrb[2].mxu0 }
 0x22f   : > { %1045 = vmax.xlane.f32.xlu1 %v3194_v36  ;;  %v3197_v38 = vpop.f32.mrb[3].mxu0 }
 0x230   : > { %v2339_v13 = vpop.f32.mrb[0].mxu1 }
 0x231   : > { %v964_v25 = vpop.f32.mrb[1].mxu1 }
 0x232   : > { %v2340_v28 = vpop.f32.mrb[2].mxu1 }
 0x233   : > { %v1440_v45 = vpack.c.bf16 %v2340_v28, %v2339_v13  ;;  %v967_v31 = vpop.f32.mrb[3].mxu1 }
 0x234   : > { %v1439_v14 = vpack.c.bf16 %v967_v31, %v964_v25  ;;  %v3199_v48 = vpop.f32.mrb[4].mxu0 }
 0x235   : > { %1047 = vmax.xlane.f32.xlu0 %v3199_v48  ;;  %v3202_v32 = vpop.f32.mrb[5].mxu0 }
 0x236   : > { %v3204_v15 = vpop.f32.mrb[6].mxu0  ;;  %2385 = vmatprep.subr.bf16.mxu0 %v1439_v14 }
 0x237   : > { %2386 = vmatpush3.bf16.msra.mxu0 %v1439_v14  ;;  %1049 = vmax.xlane.f32.xlu1 %v3204_v15  ;;  %v3217_v34 = vpop.f32.mrb[7].mxu0 }
 0x238   : > { %v2343_v35 = vpop.f32.mrb[4].mxu1  ;;  %2387 = vmatprep.subr.bf16.mxu0 %v1440_v45 }
 0x239   : > { %v980_v39 = vpop.f32.mrb[5].mxu1 }
 0x23a   : > { %v2344_v40 = vpop.f32.mrb[6].mxu1 }
 0x23b   : > { %v1442_v41 = vpack.c.bf16 %v2344_v40, %v2343_v35  ;;  %v983_v46 = vpop.f32.mrb[7].mxu1  ;;  %2388 = vmatpush3.bf16.msra.mxu0 %v1440_v45 }
 0x23c   : > { %v1441_v42 = vpack.c.bf16 %v983_v46, %v980_v39  ;;  %v3222_v43 = vpop.f32.mrb[8].mxu0 }
 0x23d   : > { %1051 = vmax.xlane.f32.xlu0 %v3222_v43  ;;  %v3225_v53 = vpop.f32.mrb[9].mxu0 }
 0x23e   : > { %v1324_v44 = vmax.f32 %v3192_v12, %v3225_v53  ;;  %v3229_v47 = vpop.f32.mrb[10].mxu0  ;;  %2389 = vmatprep.subr.bf16.mxu0 %v1441_v42 }
 0x23f   : > { %1053 = vmax.xlane.f32.xlu1 %v3229_v47  ;;  %v3233_v49 = vpop.f32.mrb[11].mxu0  ;;  %2390 = vmatpush3.bf16.msra.mxu0 %v1441_v42 }
 0x240   : > { %v1325_v29 = vmax.f32 %v3197_v38, %v3233_v49  ;;  %v2347_v50 = vpop.f32.mrb[8].mxu1  ;;  %2391 = vmatprep.subr.bf16.mxu0 %v1442_v41 }
 0x241   : > { %v996_v51 = vpop.f32.mrb[9].mxu1 }
 0x242   : > { %v2348_v55 = vpop.f32.mrb[10].mxu1 }
 0x243   : > { %v1444_v23 = vpack.c.bf16 %v2348_v55, %v2347_v50  ;;  %v999_v0 = vpop.f32.mrb[11].mxu1  ;;  %2392 = vmatpush3.bf16.msra.mxu0 %v1442_v41 }
 0x244   : > { %v1443_v56 = vpack.c.bf16 %v999_v0, %v996_v51  ;;  %v3247_v57 = vpop.f32.mrb[12].mxu0 }
 0x245   : > { %1055 = vmax.xlane.f32.xlu0 %v3247_v57  ;;  %v3251_v58 = vpop.f32.mrb[13].mxu0 }
 0x246   : > { %v1326_v59 = vmax.f32 %v3202_v32, %v3251_v58  ;;  %v3256_v60 = vpop.f32.mrb[14].mxu0  ;;  %2393 = vmatprep.subr.bf16.mxu0 %v1443_v56 }
 0x247   : > { %1057 = vmax.xlane.f32.xlu1 %v3256_v60  ;;  %v3260_v61 = vpop.f32.mrb[15].mxu0  ;;  %2394 = vmatpush3.bf16.msra.mxu0 %v1443_v56 }
 0x248   : > { %v1327_v62 = vmax.f32 %v3217_v34, %v3260_v61  ;;  %v2351_v63 = vpop.f32.mrb[12].mxu1  ;;  %2395 = vmatprep.subr.bf16.mxu0 %v1444_v23 }
 0x249   : > { %v1012_v2 = vpop.f32.mrb[13].mxu1 }
 0x24a   : > { %v2352_v11 = vpop.f32.mrb[14].mxu1 }
 0x24b   : > { %v1446_v30 = vpack.c.bf16 %v2352_v11, %v2351_v63  ;;  %v1015_v4 = vpop.f32.mrb[15].mxu1  ;;  %2396 = vmatpush3.bf16.msra.mxu0 %v1444_v23 }
 0x24c   : > { %v1445_v5 = vpack.c.bf16 %v1015_v4, %v1012_v2  ;;  %v3275_v6 = vpop.f32.mrb[16].mxu0 }
 0x24d   : > { %1059 = vmax.xlane.f32.xlu0 %v3275_v6  ;;  %v3279_v7 = vpop.f32.mrb[17].mxu0 }
 0x24e   : > { %v1328_v8 = vmax.f32 %v1324_v44, %v3279_v7  ;;  %v3283_v16 = vpop.f32.mrb[18].mxu0  ;;  %2397 = vmatprep.subr.bf16.mxu0 %v1445_v5 }
 0x24f   : > { %1061 = vmax.xlane.f32.xlu1 %v3283_v16  ;;  %v3287_v9 = vpop.f32.mrb[19].mxu0  ;;  %2398 = vmatpush3.bf16.msra.mxu0 %v1445_v5 }
 0x250   : > { %v1329_v26 = vmax.f32 %v1325_v29, %v3287_v9  ;;  %2399 = vmatprep.subr.bf16.mxu0 %v1446_v30 }
 0x253   : > { %2400 = vmatpush3.bf16.msra.mxu0 %v1446_v30 }
 0x254   : > { %v3301_v18 = vpop.f32.mrb[20].mxu0 }
 0x255   : > { %1063 = vmax.xlane.f32.xlu0 %v3301_v18  ;;  %v3305_v19 = vpop.f32.mrb[21].mxu0 }
 0x256   : > { %v1330_v20 = vmax.f32 %v1326_v59, %v3305_v19  ;;  %v3309_v21 = vpop.f32.mrb[22].mxu0 }
 0x257   : > { %1065 = vmax.xlane.f32.xlu1 %v3309_v21  ;;  %v3313_v24 = vpop.f32.mrb[23].mxu0 }
 0x258   : > { %v1331_v27 = vmax.f32 %v1327_v62, %v3313_v24 }
 0x25c   : > { %v3317_v13 = vpop.f32.mrb[24].mxu0 }
 0x25d   : > { %1067 = vmax.xlane.f32.xlu0 %v3317_v13  ;;  %v3320_v25 = vpop.f32.mrb[25].mxu0 }
 0x25e   : > { %v1332_v28 = vmax.f32 %v1328_v8, %v3320_v25  ;;  %v3323_v45 = vpop.f32.mrb[26].mxu0 }
 0x25f   : > { %1069 = vmax.xlane.f32.xlu1 %v3323_v45  ;;  %v3326_v31 = vpop.f32.mrb[27].mxu0 }
 0x260   : > { %v1333_v14 = vmax.f32 %v1329_v26, %v3326_v31 }
 0x262   : > { %v1336_v35 = vmax.f32 %v1332_v28, %v1333_v14 }
 0x264   : > { %v3329_v39 = vpop.f32.mrb[28].mxu0 }
 0x265   : > { %1071 = vmax.xlane.f32.xlu0 %v3329_v39  ;;  %v3332_v40 = vpop.f32.mrb[29].mxu0 }
 0x266   : > { %v1334_v41 = vmax.f32 %v1330_v20, %v3332_v40  ;;  %v3335_v46 = vpop.f32.mrb[30].mxu0 }
 0x267   : > { %1073 = vmax.xlane.f32.xlu1 %v3335_v46  ;;  %v3338_v42 = vpop.f32.mrb[31].mxu0 }
 0x268   : > { %v1335_v44 = vmax.f32 %v1331_v27, %v3338_v42 }
 0x26a   : > { %v1337_v29 = vmax.f32 %v1334_v41, %v1335_v44 }
 0x26c   : > { %v1338_v50 = vmax.f32 %v1336_v35, %v1337_v29 }
 0x26e   : > { %v1339_v51 = vrot.slane %v1338_v50, 4 }
 0x270   : > { %v1340_v55 = vmax.f32 %v1338_v50, %v1339_v51 }
 0x272   : > { %v1341_v23 = vrot.slane %v1340_v55, 2 }
 0x274   : > { %v1342_v0 = vmax.f32 %v1340_v55, %v1341_v23 }
 0x276   : > { %v1343_v56 = vrot.slane %v1342_v0, 1 }
 0x278   : > { %v1344_v59 = vmax.f32 %v1342_v0, %v1343_v56 }
 0x27a   : > { %v1345_v62 = vsub.f32 %v3192_v12, %v1344_v59  ;;  %v1346_v63 = vsub.f32 %v3197_v38, %v1344_v59  ;;  %v1347_v2 = vsub.f32 %v3202_v32, %v1344_v59  ;;  %v1348_v11 = vsub.f32 %v3217_v34, %v1344_v59 }
 0x27b   : > { %v1349_v30 = vsub.f32 %v3225_v53, %v1344_v59  ;;  %v1350_v4 = vsub.f32 %v3233_v49, %v1344_v59  ;;  %v1351_v5 = vsub.f32 %v3251_v58, %v1344_v59  ;;  %v1352_v8 = vsub.f32 %v3260_v61, %v1344_v59 }
 0x27c   : > { %v1353_v26 = vsub.f32 %v3279_v7, %v1344_v59  ;;  %v1354_v20 = vsub.f32 %v3287_v9, %v1344_v59  ;;  %v1355_v12 = vsub.f32 %v3305_v19, %v1344_v59  ;;  %v1356_v38 = vsub.f32 %v3313_v24, %v1344_v59 }
 0x27d   : > { %v1357_v32 = vsub.f32 %v3320_v25, %v1344_v59  ;;  %v1358_v34 = vsub.f32 %v3326_v31, %v1344_v59  ;;  %v1359_v53 = vsub.f32 %v3332_v40, %v1344_v59  ;;  %v1360_v49 = vsub.f32 %v3338_v42, %v1344_v59 }
 0x27e   : > { %v1361_v27 = vmul.f32 1.442695, %v1345_v62  ;;  %v1363_v58 = vmul.f32 1.442695, %v1346_v63  ;;  %v1365_v28 = vmul.f32 1.442695, %v1347_v2 }
 0x27f   : > { %v1367_v61 = vmul.f32 1.442695, %v1348_v11  ;;  %v1369_v7 = vmul.f32 1.442695, %v1349_v30  ;;  %v1371_v9 = vmul.f32 1.442695, %v1350_v4 }
 0x280   : > { %2627 = vpow2.f32 %v1361_v27  ;;  %v1373_v19 = vmul.f32 1.442695, %v1351_v5  ;;  %v1375_v24 = vmul.f32 1.442695, %v1352_v8  ;;  %v1377_v14 = vmul.f32 1.442695, %v1353_v26 }
 0x281   : > { %2629 = vpow2.f32 %v1363_v58  ;;  %v1379_v41 = vmul.f32 1.442695, %v1354_v20  ;;  %v1381_v29 = vmul.f32 1.442695, %v1355_v12  ;;  %v1383_v55 = vmul.f32 1.442695, %v1356_v38 }
 0x282   : > { %2631 = vpow2.f32 %v1365_v28  ;;  %v1385_v56 = vmul.f32 1.442695, %v1357_v32  ;;  %v1387_v63 = vmul.f32 1.442695, %v1358_v34  ;;  %v1389_v30 = vmul.f32 1.442695, %v1359_v53 }
 0x283   : > { %2633 = vpow2.f32 %v1367_v61  ;;  %v1391_v8 = vmul.f32 1.442695, %v1360_v49 }
 0x284   : > { %2635 = vpow2.f32 %v1369_v7 }
 0x285   : > { %2637 = vpow2.f32 %v1371_v9 }
 0x286   : > { %2639 = vpow2.f32 %v1373_v19 }
 0x287   : > { %2641 = vpow2.f32 %v1375_v24 }
 0x288   : > { %2643 = vpow2.f32 %v1377_v14 }
 0x289   : > { %2645 = vpow2.f32 %v1379_v41 }
 0x28a   : > { %v3357_v25 = vpop.eup %2627  ;;  %2647 = vpow2.f32 %v1381_v29 }
 0x28b   : > { %v3359_v31 = vpop.eup %2629  ;;  %2649 = vpow2.f32 %v1383_v55 }
 0x28c   : > { %v1393_v35 = vadd.f32 %v3359_v31, %v3357_v25  ;;  %v2632_v40 = vpop.eup %2631  ;;  %2651 = vpow2.f32 %v1385_v56 }
 0x28d   : > { %v2634_v44 = vpop.eup %2633  ;;  %2653 = vpow2.f32 %v1387_v63 }
 0x28e   : > { %v1394_v42 = vadd.f32 %v2632_v40, %v1393_v35  ;;  %v2636_v51 = vpop.eup %2635  ;;  %2655 = vpow2.f32 %v1389_v30 }
 0x28f   : > { %v2638_v0 = vpop.eup %2637  ;;  %2657 = vpow2.f32 %v1391_v8 }
 0x290   : > { %v1395_v50 = vadd.f32 %v2634_v44, %v1394_v42  ;;  %v2640_v62 = vpop.eup %2639 }
 0x291   : > { %v2642_v11 = vpop.eup %2641 }
 0x292   : > { %v1396_v23 = vadd.f32 %v2636_v51, %v1395_v50  ;;  %v2644_v5 = vpop.eup %2643 }
 0x293   : > { %v2646_v20 = vpop.eup %2645 }
 0x294   : > { %v1397_v59 = vadd.f32 %v2638_v0, %v1396_v23  ;;  %v2648_v38 = vpop.eup %2647 }
 0x295   : > { %v2650_v32 = vpop.eup %2649 }
 0x296   : > { %v1398_v2 = vadd.f32 %v2640_v62, %v1397_v59  ;;  %v2652_v28 = vpop.eup %2651 }
 0x297   : > { %v2654_v34 = vpop.eup %2653 }
 0x298   : > { %v1399_v4 = vadd.f32 %v2642_v11, %v1398_v2  ;;  %v2656_v9 = vpop.eup %2655 }
 0x299   : > { %v2658_v53 = vpop.eup %2657 }
 0x29a   : > { %v1400_v26 = vadd.f32 %v2644_v5, %v1399_v4 }
 0x29c   : > { %v1401_v12 = vadd.f32 %v2646_v20, %v1400_v26 }
 0x29e   : > { %v1402_v27 = vadd.f32 %v2648_v38, %v1401_v12 }
 0x2a0   : > { %v1403_v58 = vadd.f32 %v2650_v32, %v1402_v27 }
 0x2a2   : > { %v1404_v61 = vadd.f32 %v2652_v28, %v1403_v58 }
 0x2a4   : > { %v1405_v7 = vadd.f32 %v2654_v34, %v1404_v61 }
 0x2a6   : > { %v1406_v19 = vadd.f32 %v2656_v9, %v1405_v7 }
 0x2a8   : > { %v1407_v24 = vadd.f32 %v2658_v53, %v1406_v19 }
 0x2aa   : > { %v1408_v14 = vrot.slane %v1407_v24, 4 }
 0x2ac   : > { %v1409_v35 = vadd.f32 %v1408_v14, %v1407_v24 }
 0x2ae   : > { %v1410_v49 = vrot.slane %v1409_v35, 2 }
 0x2b0   : > { %v1411_v41 = vadd.f32 %v1410_v49, %v1409_v35 }
 0x2b2   : > { %v1412_v42 = vrot.slane %v1411_v41, 1 }
 0x2b4   : > { %v1413_v29 = vadd.f32 %v1412_v42, %v1411_v41 }
 0x2b6   : > { %2659 = vrcp.f32 %v1413_v29 }
 0x2ba   : > { %v1044_v50 = vpop.xlane.xlu0 %1043 }
 0x2bb   : > { %v1075_v55 = vsub.f32 %v3189_v17, %v1044_v50 }
 0x2bc   : > { %v1046_v23 = vpop.xlane.xlu1 %1045 }
 0x2bd   : > { %v1091_v56 = vmul.f32 1.442695, %v1075_v55  ;;  %v1076_v59 = vsub.f32 %v3194_v36, %v1046_v23 }
 0x2bf   : > { %v1093_v63 = vmul.f32 1.442695, %v1076_v59  ;;  %2661 = vpow2.f32 %v1091_v56 }
 0x2c0   : > { %v2660_v2 = vpop.eup %2659 }
 0x2c1   : > { %2663 = vpow2.f32 %v1093_v63  ;;  %v1415_v30 = vmul.f32 %v2660_v2, %v3357_v25  ;;  %v1416_v4 = vmul.f32 %v2660_v2, %v3359_v31  ;;  %v1417_v8 = vmul.f32 %v2660_v2, %v2632_v40 }
 0x2c2   : > { %v1048_v26 = vpop.xlane.xlu0 %1047  ;;  %v1418_v12 = vmul.f32 %v2660_v2, %v2634_v44  ;;  %v1419_v27 = vmul.f32 %v2660_v2, %v2636_v51  ;;  %v1420_v58 = vmul.f32 %v2660_v2, %v2638_v0  ;;  %v1421_v61 = vmul.f32 %v2660_v2, %v2640_v62 }
 0x2c3   : > { %v1431_v7 = vpack.c.bf16 %v1416_v4, %v1415_v30  ;;  %v1077_v17 = vsub.f32 %v3199_v48, %v1048_v26  ;;  %v1422_v19 = vmul.f32 %v2660_v2, %v2642_v11  ;;  %v1423_v24 = vmul.f32 %v2660_v2, %v2644_v5 }
 0x2c4   : > { %v1050_v36 = vpop.xlane.xlu1 %1049  ;;  %v1432_v14 = vpack.c.bf16 %v1418_v12, %v1417_v8  ;;  %v1433_v35 = vpack.c.bf16 %v1420_v58, %v1419_v27  ;;  %v1424_v49 = vmul.f32 %v2660_v2, %v2646_v20  ;;  %v1425_v41 = vmul.f32 %v2660_v2, %v2648_v38 }
 0x2c5   : > { %1447 = vxpose.xlu0.c.b16.start [1/8] %v1431_v7, 128  ;;  %v1095_v25 = vmul.f32 1.442695, %v1077_v17  ;;  %v1078_v31 = vsub.f32 %v3204_v15, %v1050_v36  ;;  %v1434_v40 = vpack.c.bf16 %v1422_v19, %v1421_v61  ;;  %v1426_v42 = vmul.f32 %v2660_v2, %v2650_v32 }
 0x2c6   : > { %v1435_v44 = vpack.c.bf16 %v1424_v49, %v1423_v24  ;;  %v1427_v51 = vmul.f32 %v2660_v2, %v2652_v28  ;;  %v1428_v0 = vmul.f32 %v2660_v2, %v2654_v34  ;;  %v1429_v62 = vmul.f32 %v2660_v2, %v2656_v9 }
 0x2c7   : > { %v1097_v29 = vmul.f32 1.442695, %v1078_v31  ;;  %v1436_v50 = vpack.c.bf16 %v1426_v42, %v1425_v41  ;;  %v1430_v48 = vmul.f32 %v2660_v2, %v2658_v53  ;;  %2665 = vpow2.f32 %v1095_v25 }
 0x2c8   : > { %v1437_v11 = vpack.c.bf16 %v1428_v0, %v1427_v51 }
 0x2c9   : > { %2667 = vpow2.f32 %v1097_v29  ;;  %1448 = vxpose.xlu0.c.b16.cont [2/8] %v1432_v14, 128  ;;  %v1438_v5 = vpack.c.bf16 %v1430_v48, %v1429_v62  ;;  %v3369_v20 = vpop.eup %2661 }
 0x2ca   : > { %v1052_v38 = vpop.xlane.xlu0 %1051 }
 0x2cb   : > { %v3371_v55 = vpop.eup %2663  ;;  %v1079_v15 = vsub.f32 %v3222_v43, %v1052_v38 }
 0x2cc   : > { %v1054_v32 = vpop.xlane.xlu1 %1053  ;;  %v1123_v28 = vpack.c.bf16 %v3371_v55, %v3369_v20 }
 0x2cd   : > { %1449 = vxpose.xlu0.c.b16.cont [3/8] %v1433_v35, 128  ;;  %v1099_v34 = vmul.f32 1.442695, %v1079_v15  ;;  %v1080_v9 = vsub.f32 %v3229_v47, %v1054_v32 }
 0x2ce   : > { %2369 = vmatprep.mubr.bf16.mxu1 %v1123_v28 }
 0x2cf   : > { %v1101_v53 = vmul.f32 1.442695, %v1080_v9  ;;  %2669 = vpow2.f32 %v1099_v34 }
 0x2d1   : > { %2671 = vpow2.f32 %v1101_v53  ;;  %1450 = vxpose.xlu0.c.b16.cont [4/8] %v1434_v40, 128  ;;  %v3377_v23 = vpop.eup %2665 }
 0x2d2   : > { %v1056_v56 = vpop.xlane.xlu0 %1055 }
 0x2d3   : > { %v3379_v59 = vpop.eup %2667  ;;  %v1081_v43 = vsub.f32 %v3247_v57, %v1056_v56 }
 0x2d4   : > { %v1058_v63 = vpop.xlane.xlu1 %1057  ;;  %v1124_v2 = vpack.c.bf16 %v3379_v59, %v3377_v23 }
 0x2d5   : > { %1451 = vxpose.xlu0.c.b16.cont [5/8] %v1435_v44, 128  ;;  %v1103_v30 = vmul.f32 1.442695, %v1081_v43  ;;  %v1082_v47 = vsub.f32 %v3256_v60, %v1058_v63 }
 0x2d6   : > { %2370 = vmatmul.mubr.bf16.vlgmr.msra.gmra.mrb[16].mxu1 %v1124_v2 }
 0x2d7   : > { %v1105_v4 = vmul.f32 1.442695, %v1082_v47  ;;  %2673 = vpow2.f32 %v1103_v30 }
 0x2d9   : > { %2675 = vpow2.f32 %v1105_v4  ;;  %1452 = vxpose.xlu0.c.b16.cont [6/8] %v1436_v50, 128  ;;  %v3385_v8 = vpop.eup %2669 }
 0x2da   : > { %v1060_v26 = vpop.xlane.xlu0 %1059 }
 0x2db   : > { %v3387_v12 = vpop.eup %2671  ;;  %v1083_v57 = vsub.f32 %v3275_v6, %v1060_v26 }
 0x2dc   : > { %v1062_v27 = vpop.xlane.xlu1 %1061  ;;  %v1125_v58 = vpack.c.bf16 %v3387_v12, %v3385_v8 }
 0x2dd   : > { %1453 = vxpose.xlu0.c.b16.cont [7/8] %v1437_v11, 128  ;;  %v1107_v61 = vmul.f32 1.442695, %v1083_v57  ;;  %v1084_v60 = vsub.f32 %v3283_v16, %v1062_v27 }
 0x2de   : > { %2373 = vmatprep.mubr.bf16.mxu1 %v1125_v58 }
 0x2df   : > { %v1109_v7 = vmul.f32 1.442695, %v1084_v60  ;;  %2677 = vpow2.f32 %v1107_v61 }
 0x2e1   : > { %2679 = vpow2.f32 %v1109_v7  ;;  %1454 = vxpose.xlu0.c.b16.end [8/8] %v1438_v5, 128  ;;  %v3393_v17 = vpop.eup %2673 }
 0x2e2   : > { %v1064_v19 = vpop.xlane.xlu0 %1063 }
 0x2e3   : > { %v3395_v24 = vpop.eup %2675  ;;  %v1085_v6 = vsub.f32 %v3301_v18, %v1064_v19 }
 0x2e4   : > { %v1066_v36 = vpop.xlane.xlu1 %1065  ;;  %v1126_v14 = vpack.c.bf16 %v3395_v24, %v3393_v17 }
 0x2e5   : > { %v1111_v35 = vmul.f32 1.442695, %v1085_v6  ;;  %v1086_v49 = vsub.f32 %v3309_v21, %v1066_v36 }
 0x2e6   : > { %2374 = vmatmul.mubr.bf16.gmra.mrb[20].mxu1 %v1126_v14 }
 0x2e7   : > { %v1113_v16 = vmul.f32 1.442695, %v1086_v49  ;;  %2681 = vpow2.f32 %v1111_v35 }
 0x2e9   : > { %2683 = vpow2.f32 %v1113_v16  ;;  %v3401_v41 = vpop.eup %2677 }
 0x2ea   : > { %v1068_v25 = vpop.xlane.xlu0 %1067 }
 0x2eb   : > { %v3403_v31 = vpop.eup %2679  ;;  %v1087_v40 = vsub.f32 %v3317_v13, %v1068_v25 }
 0x2ec   : > { %v1070_v42 = vpop.xlane.xlu1 %1069  ;;  %v1127_v18 = vpack.c.bf16 %v3403_v31, %v3401_v41 }
 0x2ed   : > { %v1115_v44 = vmul.f32 1.442695, %v1087_v40  ;;  %v1088_v51 = vsub.f32 %v3323_v45, %v1070_v42 }
 0x2ee   : > { %2377 = vmatprep.mubr.bf16.mxu1 %v1127_v18 }
 0x2ef   : > { %v1117_v21 = vmul.f32 1.442695, %v1088_v51  ;;  %2685 = vpow2.f32 %v1115_v44 }
 0x2f1   : > { %2687 = vpow2.f32 %v1117_v21  ;;  %v3409_v0 = vpop.eup %2681 }
 0x2f2   : > { %v1072_v62 = vpop.xlane.xlu0 %1071 }
 0x2f3   : > { %v3411_v29 = vpop.eup %2683  ;;  %v1089_v50 = vsub.f32 %v3329_v39, %v1072_v62 }
 0x2f4   : > { %v1074_v48 = vpop.xlane.xlu1 %1073  ;;  %v1128_v13 = vpack.c.bf16 %v3411_v29, %v3409_v0 }
 0x2f5   : > { %v1119_v11 = vmul.f32 1.442695, %v1089_v50  ;;  %v1090_v5 = vsub.f32 %v3335_v46, %v1074_v48 }
 0x2f6   : > { %2378 = vmatmul.mubr.bf16.gmra.mrb[24].mxu1 %v1128_v13 }
 0x2f7   : > { %v1121_v45 = vmul.f32 1.442695, %v1090_v5  ;;  %2689 = vpow2.f32 %v1119_v11  ;;  %v3458_v11 = vld [vmem:[%s3799_s7 + $0x10] sm:$0xff]  }
 0x2f9   : > { %2691 = vpow2.f32 %v1121_v45  ;;  %v3417_v38 = vpop.eup %2685 }
 0x2fb   : > { %v3419_v15 = vpop.eup %2687 }
 0x2fc   : > { %v1129_v32 = vpack.c.bf16 %v3419_v15, %v3417_v38 }
 0x2fe   : > { %2381 = vmatprep.mubr.bf16.mxu1 %v1129_v32 }
 0x301   : > { %v3423_v39 = vpop.eup %2689 }
 0x303   : > { %v3425_v28 = vpop.eup %2691 }
 0x304   : > { %v1130_v34 = vpack.c.bf16 %v3425_v28, %v3423_v39 }
 0x306   : > { %2382 = vmatmul.mubr.bf16.gmra.mrb[28].mxu1 %v1130_v34 }
 0x32b   : > { %v1455_v46 = vpop.trf.xlu0 }
 0x32c   : > { %2401 = vmatprep.mubr.bf16.mxu0 %v1455_v46 }
 0x32f   : > { %v1456_v9 = vpop.trf.xlu0 }
 0x330   : > { %2402 = vmatmul.mubr.bf16.vlgmr.msra.gmra.mrb[32].mxu0 %v1456_v9 }
 0x333   : > { %v1457_v53 = vpop.trf.xlu0 }
 0x334   : > { %2405 = vmatprep.mubr.bf16.mxu0 %v1457_v53 }
 0x337   : > { %v1458_v56 = vpop.trf.xlu0 }
 0x338   : > { %2406 = vmatmul.mubr.bf16.gmra.mrb[36].mxu0 %v1458_v56 }
 0x33b   : > { %v1459_v43 = vpop.trf.xlu0 }
 0x33c   : > { %2409 = vmatprep.mubr.bf16.mxu0 %v1459_v43  ;;  %v3485_v43 = vld [vmem:[%s3799_s7 + $0x20] sm:$0xff]  }
 0x33f   : > { %v1460_v63 = vpop.trf.xlu0 }
 0x340   : > { %2410 = vmatmul.mubr.bf16.gmra.mrb[40].mxu0 %v1460_v63  ;;  %v3492_v63 = vld [vmem:[%s3799_s7 + $0x28] sm:$0xff]  }
 0x343   : > { %v1461_v2 = vpop.trf.xlu0 }
 0x344   : > { %2413 = vmatprep.mubr.bf16.mxu0 %v1461_v2 }
 0x347   : > { %v1462_v30 = vpop.trf.xlu0 }
 0x348   : > { %2414 = vmatmul.mubr.bf16.gmra.mrb[44].mxu0 %v1462_v30 }
 0x3a9   : > { %v2371_v47 = vpop.f32.mrb[16].mxu1 }
 0x3aa   : > { %2693 = vrcp.f32 %v2371_v47  ;;  %v1213_v4 = vpop.f32.mrb[17].mxu1 }
 0x3ab   : > { %2695 = vrcp.f32 %v1213_v4  ;;  %v2372_v26 = vpop.f32.mrb[18].mxu1 }
 0x3ac   : > { %2697 = vrcp.f32 %v2372_v26  ;;  %v1216_v57 = vpop.f32.mrb[19].mxu1 }
 0x3ad   : > { %2699 = vrcp.f32 %v1216_v57 }
 0x3b4   : > { %v2694_v27 = vpop.eup %2693 }
 0x3b5   : > { %v2696_v58 = vpop.eup %2695  ;;  %v1294_v61 = vmul.f32 %v2694_v27, %v3377_v23 }
 0x3b6   : > { %v2698_v60 = vpop.eup %2697  ;;  %v1292_v7 = vmul.f32 %v2696_v58, %v3369_v20  ;;  %v3502_v58 = vld [vmem:[%s3799_s7 + $0x30] sm:$0xff]  }
 0x3b7   : > { %v2700_v19 = vpop.eup %2699  ;;  %v1295_v6 = vmul.f32 %v2698_v60, %v3379_v59  ;;  %v3433_v14 = vmul.f32 0.17677669, %v1294_v61  ;;  %v3447_v59 = vld [vmem:[%s3799_s7 + $0x8] sm:$0xff]  }
 0x3b8   : > { %v1293_v36 = vmul.f32 %v2700_v19, %v3371_v55  ;;  %v1308_v25 = vmul.f32 0.17677669, %v1292_v7  ;;  %v3442_v55 = vld [vmem:[%s3799_s7] sm:$0xff]  }
 0x3b9   : > { %v3435_v35 = vmul.f32 0.17677669, %v1295_v6  ;;  %v2375_v49 = vpop.f32.mrb[20].mxu1  ;;  %2449 = vmatprep.subr.bf16.mxu0 %v3442_v55 }
 0x3ba   : > { %2701 = vrcp.f32 %v2375_v49  ;;  %v1229_v16 = vpop.f32.mrb[21].mxu1  ;;  %v1309_v40 = vmul.f32 0.17677669, %v1293_v36  ;;  %2450 = vmatpush3.bf16.msra.mxu0 %v3442_v55 }
 0x3bb   : > { %2703 = vrcp.f32 %v1229_v16  ;;  %v2376_v42 = vpop.f32.mrb[22].mxu1  ;;  %v1593_v23 = vpack.c.bf16 %v3435_v35, %v3433_v14  ;;  %2451 = vmatprep.subr.bf16.mxu0 %v3447_v59 }
 0x3bc   : > { %2705 = vrcp.f32 %v2376_v42  ;;  %v1232_v20 = vpop.f32.mrb[23].mxu1  ;;  %v1592_v18 = vpack.c.bf16 %v1309_v40, %v1308_v25 }
 0x3bd   : > { %2707 = vrcp.f32 %v1232_v20 }
 0x3be   : > { %2433 = vmatprep.mubr.bf16.mxu1 %v1592_v18  ;;  %2452 = vmatpush3.bf16.msra.mxu0 %v3447_v59 }
 0x3bf   : > { %2453 = vmatprep.subr.bf16.mxu0 %v3458_v11 }
 0x3c2   : > { %2454 = vmatpush3.bf16.msra.mxu0 %v3458_v11 }
 0x3c4   : > { %v2702_v44 = vpop.eup %2701 }
 0x3c5   : > { %v2704_v51 = vpop.eup %2703  ;;  %v1298_v21 = vmul.f32 %v2702_v44, %v3393_v17 }
 0x3c6   : > { %v2706_v62 = vpop.eup %2705  ;;  %v1296_v50 = vmul.f32 %v2704_v51, %v3385_v8 }
 0x3c7   : > { %v2708_v48 = vpop.eup %2707  ;;  %v1299_v13 = vmul.f32 %v2706_v62, %v3395_v24  ;;  %v3461_v45 = vmul.f32 0.17677669, %v1298_v21 }
 0x3c8   : > { %v1297_v5 = vmul.f32 %v2708_v48, %v3387_v12  ;;  %v3465_v34 = vmul.f32 0.17677669, %v1296_v50  ;;  %v3476_v12 = vld [vmem:[%s3799_s7 + $0x18] sm:$0xff]  }
 0x3c9   : > { %v2379_v17 = vpop.f32.mrb[24].mxu1  ;;  %v3463_v32 = vmul.f32 0.17677669, %v1299_v13  ;;  %2455 = vmatprep.subr.bf16.mxu0 %v3476_v12 }
 0x3ca   : > { %2709 = vrcp.f32 %v2379_v17  ;;  %v1245_v8 = vpop.f32.mrb[25].mxu1  ;;  %v3467_v46 = vmul.f32 0.17677669, %v1297_v5  ;;  %2456 = vmatpush3.bf16.msra.mxu0 %v3476_v12  ;;  %v1561_v17 = vunpack.c.h.bf16 %v3209_v22 }
 0x3cb   : > { %2711 = vrcp.f32 %v1245_v8  ;;  %v2380_v24 = vpop.f32.mrb[26].mxu1  ;;  %v1595_v9 = vpack.c.bf16 %v3463_v32, %v3461_v45  ;;  %2457 = vmatprep.subr.bf16.mxu0 %v3485_v43 }
 0x3cc   : > { %2713 = vrcp.f32 %v2380_v24  ;;  %v1248_v53 = vpop.f32.mrb[27].mxu1  ;;  %v1594_v56 = vpack.c.bf16 %v3467_v46, %v3465_v34 }
 0x3cd   : > { %2715 = vrcp.f32 %v1248_v53 }
 0x3ce   : > { %2458 = vmatpush3.bf16.msra.mxu0 %v3485_v43 }
 0x3cf   : > { %2459 = vmatprep.subr.bf16.mxu0 %v3492_v63 }
 0x3d2   : > { %2460 = vmatpush3.bf16.msra.mxu0 %v3492_v63 }
 0x3d3   : > { %2461 = vmatprep.subr.bf16.mxu0 %v3502_v58 }
 0x3d4   : > { %v2710_v2 = vpop.eup %2709 }
 0x3d5   : > { %v2712_v30 = vpop.eup %2711  ;;  %v1302_v47 = vmul.f32 %v2710_v2, %v3409_v0 }
 0x3d6   : > { %v2714_v4 = vpop.eup %2713  ;;  %v1300_v26 = vmul.f32 %v2712_v30, %v3401_v41  ;;  %2462 = vmatpush3.bf16.msra.mxu0 %v3502_v58 }
 0x3d7   : > { %v2716_v57 = vpop.eup %2715  ;;  %v1303_v27 = vmul.f32 %v2714_v4, %v3411_v29  ;;  %v3505_v7 = vmul.f32 0.17677669, %v1302_v47 }
 0x3d8   : > { %v1301_v61 = vmul.f32 %v2716_v57, %v3403_v31  ;;  %v3509_v19 = vmul.f32 0.17677669, %v1300_v26 }
 0x3d9   : > { %v2383_v60 = vpop.f32.mrb[28].mxu1  ;;  %v3507_v0 = vmul.f32 0.17677669, %v1303_v27  ;;  %v1566_v27 = vunpack.c.l.bf16 %v3245_v54 }
 0x3da   : > { %2717 = vrcp.f32 %v2383_v60  ;;  %v1261_v41 = vpop.f32.mrb[29].mxu1  ;;  %v3511_v6 = vmul.f32 0.17677669, %v1301_v61  ;;  %v1567_v61 = vunpack.c.h.bf16 %v3245_v54  ;;  %v1570_v54 = vunpack.c.l.bf16 %v3273_v3 }
 0x3db   : > { %2719 = vrcp.f32 %v1261_v41  ;;  %v2384_v29 = vpop.f32.mrb[30].mxu1  ;;  %v1597_v36 = vpack.c.bf16 %v3507_v0, %v3505_v7  ;;  %v1565_v41 = vunpack.c.h.bf16 %v3240_v52 }
 0x3dc   : > { %2721 = vrcp.f32 %v2384_v29  ;;  %v1264_v31 = vpop.f32.mrb[31].mxu1  ;;  %v1596_v49 = vpack.c.bf16 %v3511_v6, %v3509_v19 }
 0x3dd   : > { %2723 = vrcp.f32 %v1264_v31 }
 0x3e4   : > { %v2718_v16 = vpop.eup %2717 }
 0x3e5   : > { %v2720_v25 = vpop.eup %2719  ;;  %v1306_v40 = vmul.f32 %v2718_v16, %v3423_v39 }
 0x3e6   : > { %v2722_v42 = vpop.eup %2721  ;;  %v1304_v20 = vmul.f32 %v2720_v25, %v3417_v38  ;;  %v1562_v38 = vunpack.c.l.bf16 %v3214_v33 }
 0x3e7   : > { %v2724_v18 = vpop.eup %2723  ;;  %v1307_v44 = vmul.f32 %v2722_v42, %v3425_v28  ;;  %v3524_v21 = vmul.f32 0.17677669, %v1306_v40  ;;  %v1563_v28 = vunpack.c.h.bf16 %v3214_v33  ;;  %v1564_v33 = vunpack.c.l.bf16 %v3240_v52 }
 0x3e8   : > { %v1305_v51 = vmul.f32 %v2724_v18, %v3419_v15  ;;  %v3528_v50 = vmul.f32 0.17677669, %v1304_v20  ;;  %v1560_v15 = vunpack.c.l.bf16 %v3209_v22  ;;  %v1568_v52 = vunpack.c.l.bf16 %v3268_v1 }
 0x3e9   : > { %v3526_v62 = vmul.f32 0.17677669, %v1307_v44  ;;  %v1571_v44 = vunpack.c.h.bf16 %v3273_v3  ;;  %v1574_v3 = vunpack.c.l.bf16 %v3299_v10 }
 0x3ea   : > { %v3530_v48 = vmul.f32 0.17677669, %v1305_v51 }
 0x3eb   : > { %v1599_v13 = vpack.c.bf16 %v3526_v62, %v3524_v21 }
 0x3ec   : > { %v1598_v39 = vpack.c.bf16 %v3530_v48, %v3528_v50 }
 0x403   : > { %v2403_v5 = vpop.f32.mrb[32].mxu0 }
 0x404   : > { %v1497_v8 = vpop.f32.mrb[33].mxu0  ;;  %v1578_v53 = vmul.f32 %v2403_v5, %v1562_v38  ;;  %v1569_v38 = vunpack.c.h.bf16 %v3268_v1  ;;  %v1572_v1 = vunpack.c.l.bf16 %v3294_v37 }
 0x405   : > { %v2404_v24 = vpop.f32.mrb[34].mxu0  ;;  %v1576_v47 = vmul.f32 %v1560_v15, %v1497_v8 }
 0x406   : > { %v1579_v2 = vmul.f32 %v2404_v24, %v1563_v28  ;;  %v1500_v30 = vpop.f32.mrb[35].mxu0 }
 0x407   : > { %v1577_v4 = vmul.f32 %v1561_v17, %v1500_v30 }
 0x408   : > { %v1601_v26 = vpack.c.bf16 %v1579_v2, %v1578_v53 }
 0x409   : > { %v1600_v57 = vpack.c.bf16 %v1577_v4, %v1576_v47  ;;  %v1575_v47 = vunpack.c.h.bf16 %v3299_v10 }
 0x40b   : > { %v2407_v60 = vpop.f32.mrb[36].mxu0  ;;  %2417 = vmatprep.subr.bf16.mxu1 %v1600_v57 }
 0x40c   : > { %v1513_v22 = vpop.f32.mrb[37].mxu0  ;;  %2418 = vmatpush3.bf16.msra.mxu1 %v1600_v57  ;;  %v1582_v31 = vmul.f32 %v2407_v60, %v1566_v27 }
 0x40d   : > { %v2408_v29 = vpop.f32.mrb[38].mxu0  ;;  %2419 = vmatprep.subr.bf16.mxu1 %v1601_v26  ;;  %v1580_v40 = vmul.f32 %v1564_v33, %v1513_v22 }
 0x40e   : > { %v1583_v16 = vmul.f32 %v2408_v29, %v1567_v61  ;;  %v1516_v25 = vpop.f32.mrb[39].mxu0 }
 0x40f   : > { %v1581_v42 = vmul.f32 %v1565_v41, %v1516_v25 }
 0x410   : > { %v1603_v20 = vpack.c.bf16 %v1583_v16, %v1582_v31  ;;  %2420 = vmatpush3.bf16.msra.mxu1 %v1601_v26  ;;  %v1573_v26 = vunpack.c.h.bf16 %v3294_v37  ;;  %v2586_v37 = vld [vmem:[%s3799_s7 + $0x38] sm:$0xff]  }
 0x411   : > { %v1602_v18 = vpack.c.bf16 %v1581_v42, %v1580_v40  ;;  %2463 = vmatprep.subr.bf16.mxu0 %v2586_v37 }
 0x412   : > { %2464 = vmatpush3.bf16.msra.mxu0 %v2586_v37 }
 0x413   : > { %v2411_v51 = vpop.f32.mrb[40].mxu0  ;;  %2421 = vmatprep.subr.bf16.mxu1 %v1602_v18 }
 0x414   : > { %v1529_v28 = vpop.f32.mrb[41].mxu0  ;;  %2422 = vmatpush3.bf16.msra.mxu1 %v1602_v18  ;;  %v1586_v15 = vmul.f32 %v2411_v51, %v1570_v54 }
 0x415   : > { %v2412_v5 = vpop.f32.mrb[42].mxu0  ;;  %2423 = vmatprep.subr.bf16.mxu1 %v1603_v20  ;;  %v1584_v24 = vmul.f32 %v1568_v52, %v1529_v28 }
 0x416   : > { %v1587_v17 = vmul.f32 %v2412_v5, %v1571_v44  ;;  %v1532_v8 = vpop.f32.mrb[43].mxu0 }
 0x417   : > { %v1585_v53 = vmul.f32 %v1569_v38, %v1532_v8 }
 0x418   : > { %v1605_v2 = vpack.c.bf16 %v1587_v17, %v1586_v15  ;;  %2424 = vmatpush3.bf16.msra.mxu1 %v1603_v20 }
 0x419   : > { %v1604_v30 = vpack.c.bf16 %v1585_v53, %v1584_v24 }
 0x41b   : > { %v2415_v4 = vpop.f32.mrb[44].mxu0  ;;  %2425 = vmatprep.subr.bf16.mxu1 %v1604_v30 }
 0x41c   : > { %v1545_v57 = vpop.f32.mrb[45].mxu0  ;;  %2426 = vmatpush3.bf16.msra.mxu1 %v1604_v30  ;;  %v1590_v61 = vmul.f32 %v2415_v4, %v1574_v3 }
 0x41d   : > { %v2416_v27 = vpop.f32.mrb[46].mxu0  ;;  %2427 = vmatprep.subr.bf16.mxu1 %v1605_v2  ;;  %v1588_v41 = vmul.f32 %v1572_v1, %v1545_v57 }
 0x41e   : > { %v1591_v60 = vmul.f32 %v2416_v27, %v1575_v47  ;;  %v1548_v33 = vpop.f32.mrb[47].mxu0 }
 0x41f   : > { %v1589_v22 = vmul.f32 %v1573_v26, %v1548_v33 }
 0x420   : > { %v1607_v29 = vpack.c.bf16 %v1591_v60, %v1590_v61  ;;  %2428 = vmatpush3.bf16.msra.mxu1 %v1605_v2 }
 0x421   : > { %v1606_v31 = vpack.c.bf16 %v1589_v22, %v1588_v41 }
 0x423   : > { %2429 = vmatprep.subr.bf16.mxu1 %v1606_v31 }
 0x424   : > { %2430 = vmatpush3.bf16.msra.mxu1 %v1606_v31 }
 0x425   : > { %2431 = vmatprep.subr.bf16.mxu1 %v1607_v29 }
 0x428   : > { %2432 = vmatpush3.bf16.msra.mxu1 %v1607_v29 }
 0x429   : > { %2481 = vmatprep.subr.bf16.mxu1 %v3442_v55 }
 0x42b   : > { %2434 = vmatmul.mubr.bf16.vlgmr.msra.gmra.mrb[32].mxu1 %v1593_v23 }
 0x42c   : > { %2437 = vmatprep.mubr.bf16.mxu1 %v1594_v56  ;;  %2489 = vmatpush3.bf16.msra.mxu1 %v3442_v55 }
 0x42d   : > { %2482 = vmatprep.subr.bf16.mxu1 %v3447_v59 }
 0x430   : > { %2490 = vmatpush3.bf16.msra.mxu1 %v3447_v59 }
 0x431   : > { %2483 = vmatprep.subr.bf16.mxu1 %v3458_v11 }
 0x433   : > { %2438 = vmatmul.mubr.bf16.gmra.mrb[36].mxu1 %v1595_v9 }
 0x434   : > { %2441 = vmatprep.mubr.bf16.mxu1 %v1596_v49  ;;  %2491 = vmatpush3.bf16.msra.mxu1 %v3458_v11 }
 0x435   : > { %2484 = vmatprep.subr.bf16.mxu1 %v3476_v12 }
 0x438   : > { %2492 = vmatpush3.bf16.msra.mxu1 %v3476_v12 }
 0x439   : > { %2485 = vmatprep.subr.bf16.mxu1 %v3485_v43 }
 0x43b   : > { %2442 = vmatmul.mubr.bf16.gmra.mrb[40].mxu1 %v1597_v36 }
 0x43c   : > { %2445 = vmatprep.mubr.bf16.mxu1 %v1598_v39  ;;  %2493 = vmatpush3.bf16.msra.mxu1 %v3485_v43 }
 0x43d   : > { %2486 = vmatprep.subr.bf16.mxu1 %v3492_v63 }
 0x440   : > { %2494 = vmatpush3.bf16.msra.mxu1 %v3492_v63 }
 0x441   : > { %2487 = vmatprep.subr.bf16.mxu1 %v3502_v58 }
 0x443   : > { %2446 = vmatmul.mubr.bf16.gmra.mrb[44].mxu1 %v1599_v13 }
 0x444   : > { %2495 = vmatpush3.bf16.msra.mxu1 %v3502_v58 }
 0x445   : > { %2488 = vmatprep.subr.bf16.mxu1 %v2586_v37 }
 0x448   : > { %2496 = vmatpush3.bf16.msra.mxu1 %v2586_v37 }
 0x4fe   : > { %v2435_v10 = vpop.f32.mrb[32].mxu1 }
 0x4ff   : > { %v1642_v14 = vpop.f32.mrb[33].mxu1 }
 0x500   : > { %v2436_v35 = vpop.f32.mrb[34].mxu1 }
 0x501   : > { %v1706_v23 = vpack.c.bf16 %v2436_v35, %v2435_v10  ;;  %v1645_v55 = vpop.f32.mrb[35].mxu1 }
 0x502   : > { %v1705_v59 = vpack.c.bf16 %v1645_v55, %v1642_v14 }
 0x504   : > { %2465 = vmatprep.mubr.bf16.mxu0 %v1705_v59 }
 0x505   : > { %2466 = vmatmul.mubr.bf16.vlgmr.msra.gmra.mrb[48].mxu0 %v1706_v23 }
 0x506   : > { %v2439_v11 = vpop.f32.mrb[36].mxu1 }
 0x507   : > { %v1658_v45 = vpop.f32.mrb[37].mxu1 }
 0x508   : > { %v2440_v32 = vpop.f32.mrb[38].mxu1 }
 0x509   : > { %v1708_v34 = vpack.c.bf16 %v2440_v32, %v2439_v11  ;;  %v1661_v46 = vpop.f32.mrb[39].mxu1 }
 0x50a   : > { %v1707_v9 = vpack.c.bf16 %v1661_v46, %v1658_v45 }
 0x50c   : > { %2469 = vmatprep.mubr.bf16.mxu0 %v1707_v9 }
 0x50d   : > { %2470 = vmatmul.mubr.bf16.gmra.mrb[52].mxu0 %v1708_v34 }
 0x50e   : > { %v2443_v12 = vpop.f32.mrb[40].mxu1 }
 0x50f   : > { %v1674_v56 = vpop.f32.mrb[41].mxu1 }
 0x510   : > { %v2444_v43 = vpop.f32.mrb[42].mxu1 }
 0x511   : > { %v1710_v63 = vpack.c.bf16 %v2444_v43, %v2443_v12  ;;  %v1677_v58 = vpop.f32.mrb[43].mxu1 }
 0x512   : > { %v1709_v7 = vpack.c.bf16 %v1677_v58, %v1674_v56 }
 0x514   : > { %2473 = vmatprep.mubr.bf16.mxu1 %v1709_v7 }
 0x515   : > { %2474 = vmatmul.mubr.bf16.vlgmr.msra.gmra.mrb[48].mxu1 %v1710_v63 }
 0x516   : > { %v2447_v0 = vpop.f32.mrb[44].mxu1 }
 0x517   : > { %v1690_v19 = vpop.f32.mrb[45].mxu1 }
 0x518   : > { %v2448_v6 = vpop.f32.mrb[46].mxu1 }
 0x519   : > { %v1712_v36 = vpack.c.bf16 %v2448_v6, %v2447_v0  ;;  %v1693_v49 = vpop.f32.mrb[47].mxu1 }
 0x51a   : > { %v1711_v21 = vpack.c.bf16 %v1693_v49, %v1690_v19 }
 0x51c   : > { %2477 = vmatprep.mubr.bf16.mxu1 %v1711_v21 }
 0x51d   : > { %2478 = vmatmul.mubr.bf16.gmra.mrb[52].mxu1 %v1712_v36 }
 0x5d8   : > { %v2467_v62 = vpop.f32.mrb[48].mxu0 }
 0x5d9   : > { %1879 = vadd.xlane.f32.xlu1 %v2467_v62  ;;  %v1811_v50 = vpop.f32.mrb[49].mxu0 }
 0x5da   : > { %v2468_v48 = vpop.f32.mrb[50].mxu0 }
 0x5db   : > { %v1814_v13 = vpop.f32.mrb[51].mxu0 }
 0x5dd   : > { %1875 = vadd.xlane.f32.xlu1 %v1811_v50 }
 0x5e0   : > { %v2471_v39 = vpop.f32.mrb[52].mxu0 }
 0x5e1   : > { %1881 = vadd.xlane.f32.xlu1 %v2468_v48  ;;  %v1827_v16 = vpop.f32.mrb[53].mxu0 }
 0x5e2   : > { %v2472_v25 = vpop.f32.mrb[54].mxu0 }
 0x5e3   : > { %v1830_v40 = vpop.f32.mrb[55].mxu0 }
 0x5e5   : > { %1877 = vadd.xlane.f32.xlu1 %v1814_v13 }
 0x5e8   : > { %v2475_v42 = vpop.f32.mrb[48].mxu1 }
 0x5e9   : > { %1887 = vadd.xlane.f32.xlu1 %v2471_v39  ;;  %v3590_v20 = vpop.f32.mrb[49].mxu1 }
 0x5ea   : > { %v3592_v18 = vpop.f32.mrb[50].mxu1 }
 0x5eb   : > { %v3594_v54 = vpop.f32.mrb[51].mxu1 }
 0x5ed   : > { %1883 = vadd.xlane.f32.xlu1 %v1827_v16 }
 0x5f0   : > { %v3596_v44 = vpop.f32.mrb[52].mxu1 }
 0x5f1   : > { %1889 = vadd.xlane.f32.xlu1 %v2472_v25  ;;  %v3598_v51 = vpop.f32.mrb[53].mxu1 }
 0x5f2   : > { %v3600_v52 = vpop.f32.mrb[54].mxu1 }
 0x5f3   : > { %v3602_v38 = vpop.f32.mrb[55].mxu1 }
 0x5f5   : > { %1885 = vadd.xlane.f32.xlu1 %v1830_v40 }
 0x5f9   : > { %1895 = vadd.xlane.f32.xlu1 %v2475_v42 }
 0x5fd   : > { %1891 = vadd.xlane.f32.xlu1 %v3590_v20 }
 0x601   : > { %1897 = vadd.xlane.f32.xlu1 %v3592_v18 }
 0x605   : > { %1893 = vadd.xlane.f32.xlu1 %v3594_v54 }
 0x609   : > { %1903 = vadd.xlane.f32.xlu1 %v3596_v44 }
 0x60d   : > { %1899 = vadd.xlane.f32.xlu1 %v3598_v51 }
 0x611   : > { %1901 = vadd.xlane.f32.xlu1 %v3602_v38 }
 0x615   : > { %1905 = vadd.xlane.f32.xlu1 %v3600_v52 }
 0x666   : > { %v1880_v28 = vpop.xlane.xlu1 %1879 }
 0x667   : > { %v1909_v5 = vmul.f32 0.0078125, %v1880_v28 }
 0x669   : > { %v3611_v15 = vsub.f32 %v2467_v62, %v1909_v5 }
 0x66a   : > { %v1876_v17 = vpop.xlane.xlu1 %1875 }
 0x66b   : > { %v1907_v8 = vmul.f32 0.0078125, %v1876_v17  ;;  %v1941_v24 = vmul.f32 %v3611_v15, %v3611_v15 }
 0x66d   : > { %v3615_v53 = vsub.f32 %v1811_v50, %v1907_v8  ;;  %1959 = vadd.xlane.f32.xlu1 %v1941_v24 }
 0x66e   : > { %v1882_v2 = vpop.xlane.xlu1 %1881 }
 0x66f   : > { %v1910_v30 = vmul.f32 0.0078125, %v1882_v2  ;;  %v1939_v3 = vmul.f32 %v3615_v53, %v3615_v53 }
 0x671   : > { %v3619_v47 = vsub.f32 %v2468_v48, %v1910_v30  ;;  %1955 = vadd.xlane.f32.xlu1 %v1939_v3 }
 0x672   : > { %v1878_v4 = vpop.xlane.xlu1 %1877 }
 0x673   : > { %v1908_v1 = vmul.f32 0.0078125, %v1878_v4  ;;  %v1942_v26 = vmul.f32 %v3619_v47, %v3619_v47 }
 0x675   : > { %v3623_v57 = vsub.f32 %v1814_v13, %v1908_v1  ;;  %1961 = vadd.xlane.f32.xlu0 %v1942_v26 }
 0x676   : > { %v1888_v27 = vpop.xlane.xlu1 %1887 }
 0x677   : > { %v1913_v61 = vmul.f32 0.0078125, %v1888_v27  ;;  %v1940_v60 = vmul.f32 %v3623_v57, %v3623_v57 }
 0x679   : > { %v3627_v33 = vsub.f32 %v2471_v39, %v1913_v61  ;;  %1957 = vadd.xlane.f32.xlu1 %v1940_v60  ;;  %v3688_v61 = vld [vmem:[%s3801_s9] ss:$0 sm:$0xff] }
 0x67a   : > { %v1884_v41 = vpop.xlane.xlu1 %1883 }
 0x67b   : > { %v1911_v22 = vmul.f32 0.0078125, %v1884_v41  ;;  %v1945_v29 = vmul.f32 %v3627_v33, %v3627_v33 }
 0x67d   : > { %v3631_v31 = vsub.f32 %v1827_v16, %v1911_v22  ;;  %1967 = vadd.xlane.f32.xlu1 %v1945_v29 }
 0x67e   : > { %v1890_v37 = vpop.xlane.xlu1 %1889 }
 0x67f   : > { %v1914_v10 = vmul.f32 0.0078125, %v1890_v37  ;;  %v1943_v14 = vmul.f32 %v3631_v31, %v3631_v31 }
 0x681   : > { %v3635_v35 = vsub.f32 %v2472_v25, %v1914_v10  ;;  %1963 = vadd.xlane.f32.xlu1 %v1943_v14 }
 0x682   : > { %v1886_v23 = vpop.xlane.xlu1 %1885 }
 0x683   : > { %v1912_v55 = vmul.f32 0.0078125, %v1886_v23  ;;  %v1946_v59 = vmul.f32 %v3635_v35, %v3635_v35 }
 0x685   : > { %v3639_v11 = vsub.f32 %v1830_v40, %v1912_v55  ;;  %1969 = vadd.xlane.f32.xlu0 %v1946_v59 }
 0x686   : > { %v1896_v45 = vpop.xlane.xlu1 %1895 }
 0x687   : > { %v1917_v32 = vmul.f32 0.0078125, %v1896_v45  ;;  %v1944_v34 = vmul.f32 %v3639_v11, %v3639_v11 }
 0x689   : > { %v3643_v46 = vsub.f32 %v2475_v42, %v1917_v32  ;;  %1965 = vadd.xlane.f32.xlu1 %v1944_v34 }
 0x68a   : > { %v1892_v9 = vpop.xlane.xlu1 %1891 }
 0x68b   : > { %v1915_v12 = vmul.f32 0.0078125, %v1892_v9  ;;  %v1949_v56 = vmul.f32 %v3643_v46, %v3643_v46 }
 0x68d   : > { %v3648_v43 = vsub.f32 %v3590_v20, %v1915_v12  ;;  %1975 = vadd.xlane.f32.xlu1 %v1949_v56 }
 0x68e   : > { %v1898_v63 = vpop.xlane.xlu1 %1897 }
 0x68f   : > { %v1918_v58 = vmul.f32 0.0078125, %v1898_v63  ;;  %v1947_v7 = vmul.f32 %v3648_v43, %v3648_v43 }
 0x691   : > { %v3653_v0 = vsub.f32 %v3592_v18, %v1918_v58  ;;  %1971 = vadd.xlane.f32.xlu1 %v1947_v7 }
 0x692   : > { %v1894_v19 = vpop.xlane.xlu1 %1893 }
 0x693   : > { %v1916_v6 = vmul.f32 0.0078125, %v1894_v19  ;;  %v1950_v36 = vmul.f32 %v3653_v0, %v3653_v0 }
 0x695   : > { %v3658_v49 = vsub.f32 %v3594_v54, %v1916_v6  ;;  %1977 = vadd.xlane.f32.xlu0 %v1950_v36 }
 0x696   : > { %v1904_v21 = vpop.xlane.xlu1 %1903 }
 0x697   : > { %v1948_v62 = vmul.f32 %v3658_v49, %v3658_v49  ;;  %v1921_v48 = vmul.f32 0.0078125, %v1904_v21 }
 0x699   : > { %1973 = vadd.xlane.f32.xlu0 %v1948_v62  ;;  %v3666_v25 = vsub.f32 %v3596_v44, %v1921_v48 }
 0x69a   : > { %v1900_v50 = vpop.xlane.xlu1 %1899 }
 0x69b   : > { %v1919_v13 = vmul.f32 0.0078125, %v1900_v50  ;;  %v1953_v28 = vmul.f32 %v3666_v25, %v3666_v25 }
 0x69d   : > { %v3663_v39 = vsub.f32 %v3598_v51, %v1919_v13 }
 0x69e   : > { %v1902_v16 = vpop.xlane.xlu1 %1901 }
 0x69f   : > { %v1920_v40 = vmul.f32 0.0078125, %v1902_v16  ;;  %v1951_v42 = vmul.f32 %v3663_v39, %v3663_v39 }
 0x6a1   : > { %v3671_v20 = vsub.f32 %v3602_v38, %v1920_v40  ;;  %1979 = vadd.xlane.f32.xlu1 %v1951_v42 }
 0x6a2   : > { %v1906_v18 = vpop.xlane.xlu1 %1905 }
 0x6a3   : > { %v1922_v54 = vmul.f32 0.0078125, %v1906_v18  ;;  %v1952_v51 = vmul.f32 %v3671_v20, %v3671_v20 }
 0x6a5   : > { %v3678_v44 = vsub.f32 %v3600_v52, %v1922_v54  ;;  %1983 = vadd.xlane.f32.xlu1 %v1953_v28  ;;  %1981 = vadd.xlane.f32.xlu0 %v1952_v51 }
 0x6a7   : > { %v1954_v5 = vmul.f32 %v3678_v44, %v3678_v44 }
 0x6a9   : > { %1985 = vadd.xlane.f32.xlu0 %v1954_v5 }
 0x6fa   : > { %v1960_v38 = vpop.xlane.xlu1 %1959 }
 0x6fb   : > { %v1989_v17 = vmul.f32 0.0078125, %v1960_v38 }
 0x6fd   : > { %v2005_v8 = vadd.f32 1e-05, %v1989_v17 }
 0x6fe   : > { %v1956_v24 = vpop.xlane.xlu1 %1955 }
 0x6ff   : > { %2725 = vrsqrt.f32 %v2005_v8  ;;  %v1987_v2 = vmul.f32 0.0078125, %v1956_v24 }
 0x701   : > { %v2003_v30 = vadd.f32 1e-05, %v1987_v2 }
 0x702   : > { %v1962_v3 = vpop.xlane.xlu0 %1961 }
 0x703   : > { %2727 = vrsqrt.f32 %v2003_v30  ;;  %v1990_v4 = vmul.f32 0.0078125, %v1962_v3 }
 0x705   : > { %v2006_v52 = vadd.f32 1e-05, %v1990_v4 }
 0x706   : > { %v1958_v1 = vpop.xlane.xlu1 %1957 }
 0x707   : > { %2729 = vrsqrt.f32 %v2006_v52  ;;  %v1988_v26 = vmul.f32 0.0078125, %v1958_v1 }
 0x709   : > { %v2726_v27 = vpop.eup %2725  ;;  %v2004_v60 = vadd.f32 1e-05, %v1988_v26 }
 0x70a   : > { %v2037_v41 = vmul.f32 %v2726_v27, %v3611_v15  ;;  %v1968_v22 = vpop.xlane.xlu1 %1967 }
 0x70b   : > { %2731 = vrsqrt.f32 %v2004_v60  ;;  %v1993_v29 = vmul.f32 0.0078125, %v1968_v22 }
 0x70c   : > { %v2059_v37 = vmul.f32 %v3688_v61, %v2037_v41 }
 0x70d   : > { %v2728_v10 = vpop.eup %2727  ;;  %v2009_v14 = vadd.f32 1e-05, %v1993_v29 }
 0x70e   : > { %2075 = vst [vmem:[%s3692_s16 + $0x10] sm:$0xff] %v2059_v37  ;;  %v2035_v23 = vmul.f32 %v2728_v10, %v3615_v53  ;;  %v1964_v55 = vpop.xlane.xlu1 %1963 }
 0x70f   : > { %2733 = vrsqrt.f32 %v2009_v14  ;;  %v1991_v59 = vmul.f32 0.0078125, %v1964_v55 }
 0x710   : > { %v2057_v15 = vmul.f32 %v3688_v61, %v2035_v23 }
 0x711   : > { %v2730_v45 = vpop.eup %2729  ;;  %v2007_v32 = vadd.f32 1e-05, %v1991_v59 }
 0x712   : > { %2073 = vst [vmem:[%s3692_s16] sm:$0xff] %v2057_v15  ;;  %v2038_v34 = vmul.f32 %v2730_v45, %v3619_v47  ;;  %v1970_v9 = vpop.xlane.xlu0 %1969 }
 0x713   : > { %2735 = vrsqrt.f32 %v2007_v32  ;;  %v1994_v12 = vmul.f32 0.0078125, %v1970_v9 }
 0x714   : > { %v2060_v56 = vmul.f32 %v3688_v61, %v2038_v34 }
 0x715   : > { %v2732_v63 = vpop.eup %2731  ;;  %v2010_v58 = vadd.f32 1e-05, %v1994_v12 }
 0x716   : > { %2076 = vst [vmem:[%s3692_s16 + $0x18] sm:$0xff] %v2060_v56  ;;  %v2036_v53 = vmul.f32 %v2732_v63, %v3623_v57  ;;  %v1966_v7 = vpop.xlane.xlu1 %1965 }
 0x717   : > { %2737 = vrsqrt.f32 %v2010_v58  ;;  %v1992_v19 = vmul.f32 0.0078125, %v1966_v7 }
 0x718   : > { %v2058_v6 = vmul.f32 %v3688_v61, %v2036_v53 }
 0x719   : > { %v2734_v36 = vpop.eup %2733  ;;  %v2008_v21 = vadd.f32 1e-05, %v1992_v19 }
 0x71a   : > { %2074 = vst [vmem:[%s3692_s16 + $0x8] sm:$0xff] %v2058_v6  ;;  %v2041_v47 = vmul.f32 %v2734_v36, %v3627_v33  ;;  %v1976_v62 = vpop.xlane.xlu1 %1975 }
 0x71b   : > { %2739 = vrsqrt.f32 %v2008_v21  ;;  %v1997_v50 = vmul.f32 0.0078125, %v1976_v62 }
 0x71c   : > { %v2063_v48 = vmul.f32 %v3688_v61, %v2041_v47 }
 0x71d   : > { %v2736_v13 = vpop.eup %2735  ;;  %v2013_v16 = vadd.f32 1e-05, %v1997_v50 }
 0x71e   : > { %2079 = vst [vmem:[%s3692_s16 + $0x30] sm:$0xff] %v2063_v48  ;;  %v2039_v57 = vmul.f32 %v2736_v13, %v3631_v31  ;;  %v1972_v40 = vpop.xlane.xlu1 %1971 }
 0x71f   : > { %2741 = vrsqrt.f32 %v2013_v16  ;;  %v1995_v42 = vmul.f32 0.0078125, %v1972_v40 }
 0x720   : > { %v2061_v18 = vmul.f32 %v3688_v61, %v2039_v57 }
 0x721   : > { %v2738_v54 = vpop.eup %2737  ;;  %v2011_v28 = vadd.f32 1e-05, %v1995_v42 }
 0x722   : > { %2077 = vst [vmem:[%s3692_s16 + $0x20] sm:$0xff] %v2061_v18  ;;  %v2042_v33 = vmul.f32 %v2738_v54, %v3635_v35  ;;  %v1978_v51 = vpop.xlane.xlu0 %1977 }
 0x723   : > { %2743 = vrsqrt.f32 %v2011_v28  ;;  %v1998_v5 = vmul.f32 0.0078125, %v1978_v51 }
 0x724   : > { %v2064_v38 = vmul.f32 %v3688_v61, %v2042_v33 }
 0x725   : > { %v2740_v17 = vpop.eup %2739  ;;  %v2014_v8 = vadd.f32 1e-05, %v1998_v5 }
 0x726   : > { %2080 = vst [vmem:[%s3692_s16 + $0x38] sm:$0xff] %v2064_v38  ;;  %v2040_v31 = vmul.f32 %v2740_v17, %v3639_v11  ;;  %v1974_v24 = vpop.xlane.xlu0 %1973 }
 0x727   : > { %2745 = vrsqrt.f32 %v2014_v8  ;;  %v1996_v2 = vmul.f32 0.0078125, %v1974_v24 }
 0x728   : > { %v2062_v30 = vmul.f32 %v3688_v61, %v2040_v31 }
 0x729   : > { %v2742_v3 = vpop.eup %2741  ;;  %v2012_v4 = vadd.f32 1e-05, %v1996_v2 }
 0x72a   : > { %2078 = vst [vmem:[%s3692_s16 + $0x28] sm:$0xff] %v2062_v30  ;;  %v2045_v35 = vmul.f32 %v2742_v3, %v3643_v46 }
 0x72b   : > { %2747 = vrsqrt.f32 %v2012_v4 }
 0x72c   : > { %v2067_v52 = vmul.f32 %v3688_v61, %v2045_v35 }
 0x72d   : > { %v2744_v1 = vpop.eup %2743 }
 0x72e   : > { %2083 = vst [vmem:[%s3692_s16 + $0x50] sm:$0xff] %v2067_v52  ;;  %v2043_v26 = vmul.f32 %v2744_v1, %v3648_v43  ;;  %v1980_v27 = vpop.xlane.xlu1 %1979 }
 0x72f   : > { %v1999_v11 = vmul.f32 0.0078125, %v1980_v27 }
 0x730   : > { %v2065_v60 = vmul.f32 %v3688_v61, %v2043_v26 }
 0x731   : > { %v2746_v41 = vpop.eup %2745  ;;  %v2015_v22 = vadd.f32 1e-05, %v1999_v11 }
 0x732   : > { %2081 = vst [vmem:[%s3692_s16 + $0x40] sm:$0xff] %v2065_v60  ;;  %v2046_v29 = vmul.f32 %v2746_v41, %v3653_v0  ;;  %v1982_v37 = vpop.xlane.xlu0 %1981  ;;  %v1984_v10 = vpop.xlane.xlu1 %1983 }
 0x733   : > { %2749 = vrsqrt.f32 %v2015_v22  ;;  %v2000_v46 = vmul.f32 0.0078125, %v1982_v37  ;;  %v2001_v14 = vmul.f32 0.0078125, %v1984_v10 }
 0x734   : > { %v2068_v23 = vmul.f32 %v3688_v61, %v2046_v29 }
 0x735   : > { %v2748_v55 = vpop.eup %2747  ;;  %v2016_v43 = vadd.f32 1e-05, %v2000_v46  ;;  %v2017_v59 = vadd.f32 1e-05, %v2001_v14 }
 0x736   : > { %2084 = vst [vmem:[%s3692_s16 + $0x58] sm:$0xff] %v2068_v23  ;;  %v2044_v15 = vmul.f32 %v2748_v55, %v3658_v49  ;;  %v1986_v45 = vpop.xlane.xlu0 %1985 }
 0x737   : > { %2751 = vrsqrt.f32 %v2016_v43  ;;  %v2002_v32 = vmul.f32 0.0078125, %v1986_v45 }
 0x738   : > { %v2066_v0 = vmul.f32 %v3688_v61, %v2044_v15  ;;  %2753 = vrsqrt.f32 %v2017_v59 }
 0x739   : > { %v2018_v34 = vadd.f32 1e-05, %v2002_v32 }
 0x73a   : > { %2082 = vst [vmem:[%s3692_s16 + $0x48] sm:$0xff] %v2066_v0 }
 0x73b   : > { %2755 = vrsqrt.f32 %v2018_v34 }
 0x73d   : > { %v2750_v9 = vpop.eup %2749 }
 0x73e   : > { %v2047_v12 = vmul.f32 %v2750_v9, %v3663_v39 }
 0x740   : > { %v2069_v56 = vmul.f32 %v3688_v61, %v2047_v12 }
 0x741   : > { %v2752_v63 = vpop.eup %2751 }
 0x742   : > { %v2754_v49 = vpop.eup %2753  ;;  %2085 = vst [vmem:[%s3692_s16 + $0x60] sm:$0xff] %v2069_v56  ;;  %v2048_v58 = vmul.f32 %v2752_v63, %v3671_v20 }
 0x743   : > { %v2049_v53 = vmul.f32 %v2754_v49, %v3666_v25 }
 0x744   : > { %v2070_v7 = vmul.f32 %v3688_v61, %v2048_v58 }
 0x745   : > { %v2756_v19 = vpop.eup %2755  ;;  %v2071_v6 = vmul.f32 %v3688_v61, %v2049_v53 }
 0x746   : > { %2086 = vst [vmem:[%s3692_s16 + $0x68] sm:$0xff] %v2070_v7  ;;  %v2050_v39 = vmul.f32 %v2756_v19, %v3678_v44 }
 0x747   : > { %2087 = vst [vmem:[%s3692_s16 + $0x70] sm:$0xff] %v2071_v6 }
 0x748   : > { %v2072_v25 = vmul.f32 %v3688_v61, %v2050_v39 }
 0x74a   : > { %2088 = vst [vmem:[%s3692_s16 + $0x78] sm:$0xff] %v2072_v25 }
 0x74b   : > { %2770 = shalt.err (!%p2767_p3)
}
 0x74c   : > { %s2771_s29 = scalar_lea.hbm %s3743_s25, 2048  ;;  %s2775_s16 = scalar_lea.hbm %s3802_s10, 4096 }
 0x74d   : > { %p2772_p4 = scmp.ne.s32.totalorder %s3743_s25, %s2771_s29  ;;  %p2776_p9 = scmp.lt.u32.totalorder %s3743_s25, %s3802_s10 }
 0x74e   : > { %p2777_p10 = scmp.lt.u32.totalorder %s2775_s16, %s2771_s29  ;;  %p2779_p12 = scmp.lt.u32.totalorder %s2771_s29, %s3743_s25 }
 0x74f   : > { %p2773_p7 = pnand %p2772_p4, %p2918_p5 }
 0x750   : > { %p2778_p11 = por %p2777_p10, %p2776_p9 }
 0x751   : > { %p2774_p8 = pneg %p2773_p7 }
 0x752   : > { %p2780_p13 = por %p2779_p12, %p2778_p11 }
 0x754   : > { %p2781_p0 = pnand %p2780_p13, %p2774_p8 }
 0x756   : > { %2784 = shalt.err (!%p2781_p0)
}
 0x757   : > { %s2823_s24 = smov 128   ;;  %s2824_s26 = smov 8  }
 0x758   : > { %2497 = dma.vmem_to_hbm [thread:$0]  (%p2918_p5), %s3745_s19, 2048, %s3743_s25, %s3751_s15, %s2823_s24, %s2823_s24, %s2824_s26  }
 0x759 PF: > { %p2503_p1 = scmp.ge.s32.totalorder %s2819_s14, 2  ;;  %s2118_s27 = sand.u32 1, %s2807_s4  }
 0x75a   : > { %s2119_s28 = scalar_lea.sflag [#allocation3], %s2118_s27 }
 0x75b   : > { %p2500_p2 = pnand %p2503_p1, %p2922_p6 }
 0x75d   : > { %2802 = dma.done.wait (!%p2500_p2), %s2119_s28, 2048  }
 0x75e   : > { %2804 = vsyncadd (!%p2500_p2), %s2119_s28, 4294965248  ;;  %p20_p3 = scmp.ge.s32.totalorder %s2905_s17, 4   ;;  %s3805_s4 = smov %s2811_s5 }
 0x75f   : > { %s3806_s5 = smov %s2815_s13  ;;  %s3807_s13 = smov %s2916_s20 }
 0x760   : > { %s3808_s14 = smov %s2905_s17  ;;  %22 = sbr.rel (!%p20_p3) target bundleno = 3 (0x3), region = 101 }
 0x767   :  { %2124 = vsyncpa [#allocation3], 1 }
 0x768   :  { %2126 = vsyncpa [#allocation3 + $0x1], 1 }

</bundles_post_ra>
